<compile_context>
chip_gen: v7x
topology: tpu7x:2x2x1
jax: 0.10.0
libtpu: 0.0.40
codegen_flags: <defaults>
</compile_context>

<pallas_src>
import functools

import jax
import jax.numpy as jnp
from jax import lax
from jax.experimental import pallas as pl
from jax.experimental.pallas import tpu as pltpu


# ----------------------------------------------------------------------------
# Fused Pallas kernel (one batch element per grid step)
# ----------------------------------------------------------------------------
def _fused_nonlocal_kernel(x_ref, wp_ref, bp_ref, ww_ref, bw_ref, rc_ref,
                           o_ref, *, icp, spatial_w):
    """Fused non-local block for one batch element (all in VMEM).

    x_ref : (1, C, L)    f32   input, natural NCHW order flattened to L=H*W
    wp_ref: (3*ICP, C)   bf16  stacked [g; phi; theta] 1x1-conv weights, each
                               section zero-padded to ICP (=ceil8(IC)) rows
    bp_ref: (3*ICP, 1)   f32   stacked (padded) biases
    ww_ref: (C, ICP)     bf16  W 1x1-conv weight (eval-mode BN folded),
                               zero-padded columns
    bw_ref: (C, 1)       f32   folded W bias
    rc_ref: (2, L)       i32   [row; col] spatial index table
    o_ref : (1, C, L)    f32   z = W(y) + x
    """
    l = x_ref.shape[2]

    x = x_ref[0]                                         # (C, L) f32 residual
    x_c = x.astype(jnp.bfloat16)

    # --- g / phi / theta 1x1-conv projections: one MXU matmul, channel-major.
    proj = (jnp.dot(wp_ref[...], x_c, preferred_element_type=jnp.float32)
            + bp_ref[...])                               # (3*ICP, L) f32

    # --- sub_sample 2x2 max-pool of g and phi, natural spatial order.
    # Two XLU rotates + two maxes put each window's max at one anchor per
    # window (which corner depends only on the rotate direction).
    gphi = proj[0:2 * icp, :]                            # (2*ICP, L): [g; phi]
    r1 = jnp.maximum(gphi, pltpu.roll(gphi, shift=1, axis=1))
    pooled = jnp.maximum(r1, pltpu.roll(r1, shift=spatial_w, axis=1))
    g_pool = pooled[0:icp, :].astype(jnp.bfloat16)           # (ICP, L)
    phi_pool = pooled[icp:2 * icp, :].astype(jnp.bfloat16)   # (ICP, L)
    theta = proj[2 * icp:3 * icp, :].astype(jnp.bfloat16)    # (ICP, L)

    # Anchor mask derived from the SAME roll primitive/shifts as the data, so
    # it stays consistent with the hardware rotate direction: a key position
    # is a valid anchor iff its 1-step and W-step roll neighbors lie inside
    # its own 2x2 window (exactly one anchor per window).
    rc = rc_ref[...]                                     # (2, L) i32
    rc1 = pltpu.roll(rc, shift=1, axis=1)
    rcw = pltpu.roll(rc, shift=spatial_w, axis=1)
    row, col = rc[0:1, :], rc[1:2, :]
    row1, col1 = rc1[0:1, :], rc1[1:2, :]
    roww, colw = rcw[0:1, :], rcw[1:2, :]
    valid = ((row1 == row) & ((col1 >> 1) == (col >> 1)) &
             (colw == col) & ((roww >> 1) == (row >> 1)))
    key_bias = jnp.where(valid, 0.0, -1e30).astype(jnp.float32)   # (1, L)

    # --- attention scores over the full-width (lane-dense) key axis.
    # Non-anchor key columns get -1e30 so softmax assigns them exactly zero
    # weight; at anchors phi/g hold the pooled values -> identical to pooling
    # to M keys then attending.  Contraction is over the ICP sublane axis of
    # both operands; ICP is a whole 8-sublane tile, so any compiler-inserted
    # transpose is a single small (ICP, L) XLU pass off the critical path.
    f = lax.dot_general(theta, phi_pool,
                        dimension_numbers=(((0,), (0,)), ((), ())),
                        preferred_element_type=jnp.float32)       # (L, L)
    f = f + key_bias

    fmax = jnp.max(f, axis=-1, keepdims=True)
    e = jnp.exp(f - fmax)
    s = jnp.sum(e, axis=-1, keepdims=True)
    p = (e / s).astype(jnp.bfloat16)        # exact reciprocal: s is only (L,1)

    # y[c, n] = sum_k g_pool[c, k] * p[n, k]   (A @ B^T, flash-attn style form)
    y = lax.dot_general(g_pool, p,
                        dimension_numbers=(((1,), (1,)), ((), ())),
                        preferred_element_type=jnp.float32)       # (ICP, L)

    # --- W 1x1 conv (eval-mode BN folded) + residual.
    z = (jnp.dot(ww_ref[...], y.astype(jnp.bfloat16),
                 preferred_element_type=jnp.float32)
         + bw_ref[...] + x)                                       # (C, L)
    o_ref[0] = z


# ----------------------------------------------------------------------------
# Full forward (embedded_gaussian, dim=2, sub_sample=True, bn_layer=True)
# ----------------------------------------------------------------------------
def non_local_block_forward(x, params):
    B, C, H, W = x.shape
    assert H % 2 == 0 and W % 2 == 0, "sub_sample=True expects even H, W"
    L = H * W
    IC = params["g_w"].shape[0]
    ICP = ((IC + 7) // 8) * 8       # pad each projection section to a whole
                                    # f32 sublane tile (zero-cost slices)

    def pad_section(w_, b_):
        wpad = jnp.zeros((ICP, C), jnp.float32).at[:IC, :].set(w_)
        bpad = jnp.zeros((ICP,), jnp.float32).at[:IC].set(b_)
        return wpad, bpad

    g_w, g_b = pad_section(params["g_w"], params["g_b"])
    phi_w, phi_b = pad_section(params["phi_w"], params["phi_b"])
    theta_w, theta_b = pad_section(params["theta_w"], params["theta_b"])

    # Stack [g; phi; theta]: g/phi adjacent so one pair of in-kernel rotates
    # pools both.
    wp = jnp.concatenate([g_w, phi_w, theta_w], axis=0)
    bp = jnp.concatenate([g_b, phi_b, theta_b], axis=0)

    # Fold BatchNorm2d (eval-mode running stats) into the W 1x1 conv; pad the
    # contraction dim to ICP with zero columns.
    eps = 1e-5
    scale = params["bn_gamma"] / jnp.sqrt(params["bn_var"] + eps)
    ww = params["w_w"] * scale[:, None]                          # (C, IC)
    ww_pad = jnp.zeros((C, ICP), jnp.float32).at[:, :IC].set(ww)
    bw = (params["w_b"] - params["bn_mean"]) * scale + params["bn_beta"]

    wp_c = wp.astype(jnp.bfloat16)
    ww_c = ww_pad.astype(jnp.bfloat16)
    bp_c = bp.reshape(3 * ICP, 1).astype(jnp.float32)
    bw_c = bw.reshape(C, 1).astype(jnp.float32)

    # Natural-order flatten: pure reshape (bitcast), no HBM permute.
    x_flat = x.reshape(B, C, L).astype(jnp.float32)

    # Row / column index table (shape-only constant); lets the kernel build
    # the pool-anchor mask without in-kernel integer division.
    pos = jnp.arange(L, dtype=jnp.int32)
    rowcol = jnp.stack([pos // W, pos % W], axis=0).astype(jnp.int32)  # (2, L)

    kernel = functools.partial(_fused_nonlocal_kernel, icp=ICP, spatial_w=W)

    flops = 2 * B * (3 * ICP * C * L + ICP * L * L + ICP * L * L + C * ICP * L)
    transcendentals = B * L * L                       # exp over (L, L) scores
    bytes_accessed = (4 * 2 * B * C * L               # x in, z out (f32)
                      + 2 * (3 * ICP * C + C * ICP)   # bf16 weights
                      + 4 * (3 * ICP + C)             # f32 biases
                      + 4 * 2 * L)                    # index table

    z_flat = pl.pallas_call(
        kernel,
        out_shape=jax.ShapeDtypeStruct((B, C, L), jnp.float32),
        grid=(B,),
        in_specs=[
            pl.BlockSpec((1, C, L), lambda i: (i, 0, 0)),
            pl.BlockSpec((3 * ICP, C), lambda i: (0, 0)),
            pl.BlockSpec((3 * ICP, 1), lambda i: (0, 0)),
            pl.BlockSpec((C, ICP), lambda i: (0, 0)),
            pl.BlockSpec((C, 1), lambda i: (0, 0)),
            pl.BlockSpec((2, L), lambda i: (0, 0)),
        ],
        out_specs=pl.BlockSpec((1, C, L), lambda i: (i, 0, 0)),
        compiler_params=pltpu.CompilerParams(
            dimension_semantics=("parallel",)),
        cost_estimate=pl.CostEstimate(
            flops=flops, transcendentals=transcendentals,
            bytes_accessed=bytes_accessed),
    )(x_flat, wp_c, bp_c, ww_c, bw_c, rowcol)

    # Pure reshape back to NCHW (no permute).
    return z_flat.reshape(B, C, H, W)


# ----------------------------------------------------------------------------
# Pure-JAX f32 reference (PyTorch semantics) for a sanity check.
# ----------------------------------------------------------------------------
def _maxpool2x2_nchw(t):
    B, C, H, W = t.shape
    return t.reshape(B, C, H // 2, 2, W // 2, 2).max(axis=(3, 5))


def non_local_block_reference(x, params):
    B, C, H, W = x.shape
    x_flat = x.reshape(B, C, H * W).astype(jnp.float32)
    proj = lambda t, w, b: jnp.einsum("oc,bcl->bol", w, t) + b[None, :, None]
    g_full = proj(x_flat, params["g_w"], params["g_b"]).reshape(B, -1, H, W)
    theta = proj(x_flat, params["theta_w"], params["theta_b"])
    phi_full = proj(x_flat, params["phi_w"], params["phi_b"]).reshape(B, -1, H, W)
    IC = theta.shape[1]
    g_x = _maxpool2x2_nchw(g_full).reshape(B, IC, -1)
    phi_x = _maxpool2x2_nchw(phi_full).reshape(B, IC, -1)
    theta_t = jnp.transpose(theta, (0, 2, 1))
    f = jnp.einsum("bnc,bcm->bnm", theta_t, phi_x)
    p = jax.nn.softmax(f, axis=-1)
    y = jnp.einsum("bnm,bmc->bnc", p, jnp.transpose(g_x, (0, 2, 1)))
    y_flat = jnp.transpose(y, (0, 2, 1))
    eps = 1e-5
    scale = params["bn_gamma"] / jnp.sqrt(params["bn_var"] + eps)
    w_fold = params["w_w"] * scale[:, None]
    b_fold = (params["w_b"] - params["bn_mean"]) * scale + params["bn_beta"]
    z = proj(y_flat, w_fold, b_fold) + x_flat
    return z.reshape(B, C, H, W)


def make_params(key, in_channels, inter_channels):
    ks = jax.random.split(key, 8)
    s = 0.1
    return {
        "g_w": s * jax.random.normal(ks[0], (inter_channels, in_channels), jnp.float32),
        "g_b": s * jax.random.normal(ks[1], (inter_channels,), jnp.float32),
        "theta_w": s * jax.random.normal(ks[2], (inter_channels, in_channels), jnp.float32),
        "theta_b": s * jax.random.normal(ks[3], (inter_channels,), jnp.float32),
        "phi_w": s * jax.random.normal(ks[4], (inter_channels, in_channels), jnp.float32),
        "phi_b": s * jax.random.normal(ks[5], (inter_channels,), jnp.float32),
        "w_w": s * jax.random.normal(ks[6], (in_channels, inter_channels), jnp.float32),
        "w_b": s * jax.random.normal(ks[7], (in_channels,), jnp.float32),
        # BatchNorm2d eval-mode statistics / affine.  NOTE: the PyTorch module
        # zero-inits gamma/beta (identity-residual init); nontrivial values
        # are used here so the W path is exercised.
        "bn_gamma": jnp.ones((in_channels,), jnp.float32),
        "bn_beta": jnp.zeros((in_channels,), jnp.float32),
        "bn_mean": jnp.zeros((in_channels,), jnp.float32),
        "bn_var": jnp.ones((in_channels,), jnp.float32),
    }


if __name__ == "__main__":
    key = jax.random.PRNGKey(0)
    k_x, k_p = jax.random.split(key)

    B, C, H, W = 2, 4, 16, 16          # NCHW, like the PyTorch module
    IC = C // 2                        # inter_channels = in_channels // 2
    x = jax.random.normal(k_x, (B, C, H, W), jnp.float32)
    params = make_params(k_p, C, IC)

    fwd = jax.jit(non_local_block_forward)
    z = jax.block_until_ready(fwd(x, params))

    z_ref = non_local_block_reference(x, params)
    assert z.shape == (B, C, H, W)
    max_err = float(jnp.max(jnp.abs(z - z_ref)))
    assert jnp.allclose(z, z_ref, atol=2e-2, rtol=2e-2), (
        f"mismatch vs reference (max abs err {max_err})")

    # Second config exercises a different spatial shape and a larger
    # inter_channels padding path (B=1, C=8, IC=4, L=128).
    x2 = jax.random.normal(jax.random.PRNGKey(1), (1, 8, 16, 8), jnp.float32)
    params2 = make_params(jax.random.PRNGKey(2), 8, 4)
    z2 = jax.block_until_ready(jax.jit(non_local_block_forward)(x2, params2))
    z2_ref = non_local_block_reference(x2, params2)
    max_err2 = float(jnp.max(jnp.abs(z2 - z2_ref)))
    assert jnp.allclose(z2, z2_ref, atol=2e-2, rtol=2e-2), (
        f"mismatch vs reference on config 2 (max abs err {max_err2})")

    print("KERNEL_OK")
</pallas_src>

<mosaic_0001>
module attributes {stable_mosaic.version = 11 : i64} {
  func.func @_fused_nonlocal_kernel(%arg0: i32, %arg1: memref<1x4x256xf32, #tpu.memory_space<vmem>>, %arg2: memref<24x4xbf16, #tpu.memory_space<vmem>>, %arg3: memref<24x1xf32, #tpu.memory_space<vmem>>, %arg4: memref<4x8xbf16, #tpu.memory_space<vmem>>, %arg5: memref<4x1xf32, #tpu.memory_space<vmem>>, %arg6: memref<2x256xi32, #tpu.memory_space<vmem>>, %arg7: memref<1x4x256xf32, #tpu.memory_space<vmem>>) attributes {dimension_semantics = [#tpu.dimension_semantics<parallel>], iteration_bounds = array<i64: 2>, scalar_prefetch = 0 : i64, scratch_operands = 0 : i64, tpu.core_type = #tpu.core_type<tc>, window_params = [{transform_indices = @transform_0, window_bounds = array<i64: 1, 4, 256>}, {pipeline_mode = #tpu.pipeline_mode<synchronous>, transform_indices = @transform_1, window_bounds = array<i64: 24, 4>}, {pipeline_mode = #tpu.pipeline_mode<synchronous>, transform_indices = @transform_2, window_bounds = array<i64: 24, 1>}, {pipeline_mode = #tpu.pipeline_mode<synchronous>, transform_indices = @transform_3, window_bounds = array<i64: 4, 8>}, {pipeline_mode = #tpu.pipeline_mode<synchronous>, transform_indices = @transform_4, window_bounds = array<i64: 4, 1>}, {pipeline_mode = #tpu.pipeline_mode<synchronous>, transform_indices = @transform_5, window_bounds = array<i64: 2, 256>}, {transform_indices = @transform_6, window_bounds = array<i64: 1, 4, 256>}]} {
    %c0 = arith.constant 0 : index
    %c0_0 = arith.constant 0 : index
    %c0_1 = arith.constant 0 : index
    %0 = vector.load %arg1[%c0, %c0_0, %c0_1] : memref<1x4x256xf32, #tpu.memory_space<vmem>>, vector<1x4x256xf32>
    %1 = vector.shape_cast %0 : vector<1x4x256xf32> to vector<4x256xf32>
    %2 = arith.truncf %1 : vector<4x256xf32> to vector<4x256xbf16>
    %c0_2 = arith.constant 0 : index
    %c0_3 = arith.constant 0 : index
    %3 = vector.load %arg2[%c0_2, %c0_3] : memref<24x4xbf16, #tpu.memory_space<vmem>>, vector<24x4xbf16>
    %cst = arith.constant dense<0.000000e+00> : vector<24x256xf32>
    %4 = tpu.matmul %3, %2, %cst {dimension_numbers = #tpu.dot_dimension_numbers<[1], [0], [0], [1], [0, 0, 1, 1], [], []>} : vector<24x4xbf16>, vector<4x256xbf16>, vector<24x256xf32> -> vector<24x256xf32>
    %c0_4 = arith.constant 0 : index
    %c0_5 = arith.constant 0 : index
    %5 = vector.load %arg3[%c0_4, %c0_5] : memref<24x1xf32, #tpu.memory_space<vmem>>, vector<24x1xf32>
    %6 = vector.broadcast %5 : vector<24x1xf32> to vector<24x256xf32>
    %7 = arith.addf %4, %6 : vector<24x256xf32>
    %8 = vector.extract_strided_slice %7 {offsets = [0, 0], sizes = [16, 256], strides = [1, 1]} : vector<24x256xf32> to vector<16x256xf32>
    %c1_i32 = arith.constant 1 : i32
    %9 = tpu.dynamic_rotate %8 by %c1_i32 dim 1 : vector<16x256xf32>, i32 -> vector<16x256xf32>
    %10 = arith.maximumf %8, %9 : vector<16x256xf32>
    %c16_i32 = arith.constant 16 : i32
    %11 = tpu.dynamic_rotate %10 by %c16_i32 dim 1 : vector<16x256xf32>, i32 -> vector<16x256xf32>
    %12 = arith.maximumf %10, %11 : vector<16x256xf32>
    %13 = vector.extract_strided_slice %12 {offsets = [0, 0], sizes = [8, 256], strides = [1, 1]} : vector<16x256xf32> to vector<8x256xf32>
    %14 = arith.truncf %13 : vector<8x256xf32> to vector<8x256xbf16>
    %15 = vector.extract_strided_slice %12 {offsets = [8, 0], sizes = [8, 256], strides = [1, 1]} : vector<16x256xf32> to vector<8x256xf32>
    %16 = arith.truncf %15 : vector<8x256xf32> to vector<8x256xbf16>
    %17 = vector.extract_strided_slice %7 {offsets = [16, 0], sizes = [8, 256], strides = [1, 1]} : vector<24x256xf32> to vector<8x256xf32>
    %18 = arith.truncf %17 : vector<8x256xf32> to vector<8x256xbf16>
    %c0_6 = arith.constant 0 : index
    %c0_7 = arith.constant 0 : index
    %19 = vector.load %arg6[%c0_6, %c0_7] : memref<2x256xi32, #tpu.memory_space<vmem>>, vector<2x256xi32>
    %c1_i32_8 = arith.constant 1 : i32
    %20 = tpu.dynamic_rotate %19 by %c1_i32_8 dim 1 : vector<2x256xi32>, i32 -> vector<2x256xi32>
    %c16_i32_9 = arith.constant 16 : i32
    %21 = tpu.dynamic_rotate %19 by %c16_i32_9 dim 1 : vector<2x256xi32>, i32 -> vector<2x256xi32>
    %22 = vector.extract_strided_slice %19 {offsets = [0, 0], sizes = [1, 256], strides = [1, 1]} : vector<2x256xi32> to vector<1x256xi32>
    %23 = vector.extract_strided_slice %19 {offsets = [1, 0], sizes = [1, 256], strides = [1, 1]} : vector<2x256xi32> to vector<1x256xi32>
    %24 = vector.extract_strided_slice %20 {offsets = [0, 0], sizes = [1, 256], strides = [1, 1]} : vector<2x256xi32> to vector<1x256xi32>
    %25 = vector.extract_strided_slice %20 {offsets = [1, 0], sizes = [1, 256], strides = [1, 1]} : vector<2x256xi32> to vector<1x256xi32>
    %26 = vector.extract_strided_slice %21 {offsets = [0, 0], sizes = [1, 256], strides = [1, 1]} : vector<2x256xi32> to vector<1x256xi32>
    %27 = vector.extract_strided_slice %21 {offsets = [1, 0], sizes = [1, 256], strides = [1, 1]} : vector<2x256xi32> to vector<1x256xi32>
    %28 = arith.cmpi eq, %24, %22 : vector<1x256xi32>
    %c1_i32_10 = arith.constant 1 : i32
    %29 = vector.broadcast %c1_i32_10 : i32 to vector<1x256xi32>
    %30 = arith.shrsi %25, %29 : vector<1x256xi32>
    %c1_i32_11 = arith.constant 1 : i32
    %31 = vector.broadcast %c1_i32_11 : i32 to vector<1x256xi32>
    %32 = arith.shrsi %23, %31 : vector<1x256xi32>
    %33 = arith.cmpi eq, %30, %32 : vector<1x256xi32>
    %34 = arith.andi %28, %33 : vector<1x256xi1>
    %35 = arith.cmpi eq, %27, %23 : vector<1x256xi32>
    %36 = arith.andi %34, %35 : vector<1x256xi1>
    %c1_i32_12 = arith.constant 1 : i32
    %37 = vector.broadcast %c1_i32_12 : i32 to vector<1x256xi32>
    %38 = arith.shrsi %26, %37 : vector<1x256xi32>
    %c1_i32_13 = arith.constant 1 : i32
    %39 = vector.broadcast %c1_i32_13 : i32 to vector<1x256xi32>
    %40 = arith.shrsi %22, %39 : vector<1x256xi32>
    %41 = arith.cmpi eq, %38, %40 : vector<1x256xi32>
    %42 = arith.andi %36, %41 : vector<1x256xi1>
    %cst_14 = arith.constant 0.000000e+00 : f32
    %cst_15 = arith.constant -1.000000e+30 : f32
    %43 = vector.broadcast %cst_14 : f32 to vector<1x256xf32>
    %44 = vector.broadcast %cst_15 : f32 to vector<1x256xf32>
    %45 = arith.select %42, %43, %44 : vector<1x256xi1>, vector<1x256xf32>
    %cst_16 = arith.constant dense<0.000000e+00> : vector<256x256xf32>
    %46 = tpu.matmul %18, %16, %cst_16 {dimension_numbers = #tpu.dot_dimension_numbers<[0], [0], [1], [1], [0, 1, 1, 1], [], []>} : vector<8x256xbf16>, vector<8x256xbf16>, vector<256x256xf32> -> vector<256x256xf32>
    %47 = vector.broadcast %45 : vector<1x256xf32> to vector<256x256xf32>
    %48 = arith.addf %46, %47 : vector<256x256xf32>
    %cst_17 = arith.constant dense<0xFF800000> : vector<256xf32>
    %49 = vector.multi_reduction <maximumf>, %48, %cst_17 [1] : vector<256x256xf32> to vector<256xf32>
    %50 = vector.shape_cast %49 : vector<256xf32> to vector<256x1xf32>
    %51 = vector.broadcast %50 : vector<256x1xf32> to vector<256x256xf32>
    %52 = arith.subf %48, %51 : vector<256x256xf32>
    %53 = math.exp %52 : vector<256x256xf32>
    %cst_18 = arith.constant dense<0.000000e+00> : vector<256xf32>
    %54 = vector.multi_reduction <add>, %53, %cst_18 [1] : vector<256x256xf32> to vector<256xf32>
    %55 = vector.shape_cast %54 : vector<256xf32> to vector<256x1xf32>
    %56 = vector.broadcast %55 : vector<256x1xf32> to vector<256x256xf32>
    %57 = arith.divf %53, %56 : vector<256x256xf32>
    %58 = arith.truncf %57 : vector<256x256xf32> to vector<256x256xbf16>
    %cst_19 = arith.constant dense<0.000000e+00> : vector<8x256xf32>
    %59 = tpu.matmul %14, %58, %cst_19 {dimension_numbers = #tpu.dot_dimension_numbers<[1], [1], [0], [0], [0, 0, 1, 0], [], []>} : vector<8x256xbf16>, vector<256x256xbf16>, vector<8x256xf32> -> vector<8x256xf32>
    %c0_20 = arith.constant 0 : index
    %c0_21 = arith.constant 0 : index
    %60 = vector.load %arg4[%c0_20, %c0_21] : memref<4x8xbf16, #tpu.memory_space<vmem>>, vector<4x8xbf16>
    %61 = arith.truncf %59 : vector<8x256xf32> to vector<8x256xbf16>
    %cst_22 = arith.constant dense<0.000000e+00> : vector<4x256xf32>
    %62 = tpu.matmul %60, %61, %cst_22 {dimension_numbers = #tpu.dot_dimension_numbers<[1], [0], [0], [1], [0, 0, 1, 1], [], []>} : vector<4x8xbf16>, vector<8x256xbf16>, vector<4x256xf32> -> vector<4x256xf32>
    %c0_23 = arith.constant 0 : index
    %c0_24 = arith.constant 0 : index
    %63 = vector.load %arg5[%c0_23, %c0_24] : memref<4x1xf32, #tpu.memory_space<vmem>>, vector<4x1xf32>
    %64 = vector.broadcast %63 : vector<4x1xf32> to vector<4x256xf32>
    %65 = arith.addf %62, %64 : vector<4x256xf32>
    %66 = arith.addf %65, %1 : vector<4x256xf32>
    %c0_25 = arith.constant 0 : index
    %c0_26 = arith.constant 0 : index
    %c0_27 = arith.constant 0 : index
    %67 = vector.load %arg7[%c0_25, %c0_26, %c0_27] : memref<1x4x256xf32, #tpu.memory_space<vmem>>, vector<1x4x256xf32>
    %68 = vector.shape_cast %67 : vector<1x4x256xf32> to vector<4x256xf32>
    %69 = vector.shape_cast %66 : vector<4x256xf32> to vector<1x4x256xf32>
    tpu.vector_store %arg7[%c0_25, %c0_26, %c0_27], %69 {strides = array<i32>} : memref<1x4x256xf32, #tpu.memory_space<vmem>>, vector<1x4x256xf32>,
    return
  }
  func.func @transform_0(%arg0: i32) -> (i32, i32, i32) {
    %c0_i32 = arith.constant 0 : i32
    %c0_i32_0 = arith.constant 0 : i32
    %c0_i32_1 = arith.constant 0 : i32
    return %arg0, %c0_i32, %c0_i32_0 : i32, i32, i32
  }
  func.func @transform_1(%arg0: i32) -> (i32, i32) {
    %c0_i32 = arith.constant 0 : i32
    %c0_i32_0 = arith.constant 0 : i32
    %c0_i32_1 = arith.constant 0 : i32
    return %c0_i32, %c0_i32_0 : i32, i32
  }
  func.func @transform_2(%arg0: i32) -> (i32, i32) {
    %c0_i32 = arith.constant 0 : i32
    %c0_i32_0 = arith.constant 0 : i32
    %c0_i32_1 = arith.constant 0 : i32
    return %c0_i32, %c0_i32_0 : i32, i32
  }
  func.func @transform_3(%arg0: i32) -> (i32, i32) {
    %c0_i32 = arith.constant 0 : i32
    %c0_i32_0 = arith.constant 0 : i32
    %c0_i32_1 = arith.constant 0 : i32
    return %c0_i32, %c0_i32_0 : i32, i32
  }
  func.func @transform_4(%arg0: i32) -> (i32, i32) {
    %c0_i32 = arith.constant 0 : i32
    %c0_i32_0 = arith.constant 0 : i32
    %c0_i32_1 = arith.constant 0 : i32
    return %c0_i32, %c0_i32_0 : i32, i32
  }
  func.func @transform_5(%arg0: i32) -> (i32, i32) {
    %c0_i32 = arith.constant 0 : i32
    %c0_i32_0 = arith.constant 0 : i32
    %c0_i32_1 = arith.constant 0 : i32
    return %c0_i32, %c0_i32_0 : i32, i32
  }
  func.func @transform_6(%arg0: i32) -> (i32, i32, i32) {
    %c0_i32 = arith.constant 0 : i32
    %c0_i32_0 = arith.constant 0 : i32
    %c0_i32_1 = arith.constant 0 : i32
    return %arg0, %c0_i32, %c0_i32_0 : i32, i32, i32
  }
}

</mosaic_0001>

<bundles_post_ra>
// kernel: non_local_block_forward.1
= control target key start
LH: loop header
LB: loop body
LE: loop exit
PB: predicated region body
PF: predicated region fallthrough
CT: control target
= control target key end

     0   :  { %s1760_s21 = smov 0   ;;  %s2564_s0 = inlined_call_operand.vmem [shape: f32[2,4,256], index: 0, kind: input, shape index: {}]   ;;  %s2565_s1 = inlined_call_operand.vmem [shape: bf16[24,4], index: 1, kind: input, shape index: {}]   ;;  %s2566_s2 = inlined_call_operand.vmem [shape: f32[24,1], index: 2, kind: input, shape index: {}]   ;;  %s2567_s3 = inlined_call_operand.vmem [shape: bf16[4,8], index: 3, kind: input, shape index: {}]   ;;  %s2568_s4 = inlined_call_operand.vmem [shape: f32[4,1], index: 4, kind: input, shape index: {}]   ;;  %s2569_s5 = inlined_call_operand.vmem [shape: s32[2,256], index: 5, kind: input, shape index: {}]   ;;  %s2570_s6 = inlined_call_operand.vmem [shape: f32[2,4,256], index: 6, kind: output, shape index: {}]  }
   0x1 LB: > { %s1444_s22 = sadd.s32 4294967295, %s1718_s21   ;;  %p1448_p0 = scmp.ge.s32.totalorder %s1718_s21, 1  ;;  %s1718_s21 = sphi %s1760_s21, %s16_s21  }
   0x2   : > { %p212_p1 = scmp.lt.s32.totalorder %s1718_s21, 3 }
   0x4   : > { %p213_p2 = pnand %p1448_p0, %p212_p1 }
   0x6   : > { %216 = sbr.rel (%p213_p2) target bundleno = 1721 (0x6b9), region = 44 }
   0xd   : > { %p242_p3 = scmp.lt.s32.totalorder %s1444_s22, 1  ;;  %v1720_v0 = vmov 0   ;;  %v263_v1 = vld [vmem:[%s2566_s2 + $0x8] sm:$0xff]  ;;  %vm295_vm0 = vcmask 1041408   ;;  %v1517_v7 = vld [vmem:[%s2565_s1] sm:$0xff]   ;;  %vm288_vm1 = vcmask 31744   ;;  %v361_v25 = vlaneseq }
   0xe   : > { %334 = vmatprep.mubr.bf16.mxu0 %v1720_v0  ;;  %1494 = vset.pattern.permute.xlu0 %v1720_v0  ;;  %v1518_v8 = vld [vmem:[%s2565_s1 + $0x8] ss:$0 sps:$4 sm:$0xff]   ;;  %v264_v9 = vld [vmem:[%s2566_s2 + $0x10] sm:$0xff]  ;;  %s1721_s11 = smov 1   ;;  %s1722_s12 = smov 16   ;;  %vm2571_vm4 = vcmask 1043456  }
   0xf   : > { %s2683_s22 = smov (!%p242_p3, %s1444_s22), 1  ;;  %272 = vperm.xlu0 %1494, %v263_v1   ;;  %1500 = vset.pattern.permute.xlu1 %v1720_v0  ;;  %v1805_v26 = vand.u32 127, %v361_v25  ;;  %v1723_v37 = vmov 1983009808   ;;  %v400_v40 = vshrl.u32 %v361_v25, 7  ;;  %vm521_vm5 = vcmask 64512  }
  0x10   : > { %609 = vmatprep.mubr.bf16.mxu1 %v1720_v0  ;;  %s1479_s25 = sshll.u32 %s2683_s22, 3  ;;  %277 = vperm.xlu1 %1500, %v264_v9   ;;  %v397_v38 = vunpack.c.l.s4 %v1723_v37  ;;  %v1816_v42 = vld [vmem:[%s2569_s5] sm:$0xf] }
  0x11   : > { %s1783_s28 = scalar_lea.vmem %s2564_s0, %s1479_s25  ;;  %2609 = vst [vmem:[#allocation5_spill] sm:$0xff] %v1805_v26  ;;  %vm363_vm2 = vcmp.lt.s32.totalorder %v1805_v26, 1  ;;  %vm2572_vm3 = vcmp.lt.s32.totalorder %v1805_v26, 16  ;;  %v1828_v52 = vsub.s32 0, %v400_v40  ;;  %v422_v53 = vsub.s32 2, %v400_v40  ;;  %s251_s26 = scalar_lea.vmem %s2570_s6, %s1479_s25 }
  0x12   : > { %v253_v2 = vld [vmem:[%s1783_s28] sm:$0xff]  ;;  %v398_v39 = vunpack.c.0.s8 %v397_v38  ;;  %v1831_v54 = vshra.s32 %v1816_v42, 1  ;;  %v431_v55 = vsub.s32 1, %v400_v40  ;;  %v435_v56 = vsub.s32 3, %v400_v40 }
  0x13   : > { %v1786_v3 = vcombine.high %v253_v2, %v253_v2  ;;  %v257_v4 = vpack.c.bf16 %v253_v2, %v253_v2  ;;  %v419_v59 = vrot.slane %v1816_v42, %v1828_v52  ;;  %v1836_v60 = vrot.slane %v1816_v42, %v422_v53 }
  0x14   : > { %v401_v41 = vsub.s32 %v398_v39, %v400_v40  ;;  %v432_v61 = vrot.slane %v1831_v54, %v431_v55  ;;  %v436_v62 = vrot.slane %v1831_v54, %v435_v56  ;;  %v1841_v63 = vrot.slane %v1816_v42, %v431_v55 }
  0x15   : > { %2606 = vst [vmem:[#allocation2_spill] sm:$0xff] %v1786_v3  ;;  %v258_v5 = vpack.c.bf16 %v1786_v3, %v1786_v3  ;;  %v297_v6 = vsel %vm295_vm0, %v257_v4, 0  ;;  %v1844_v1 = vrot.slane %v1816_v42, %v435_v56  ;;  %v470_v4 = vrot.slane %v1831_v54, %v1828_v52 }
  0x16   : > { %v402_v43 = vrot.slane %v1816_v42, %v401_v41 }
  0x17   : > { %1455 = vmatprep.subr.msk.bf16.mxu0 %vm295_vm0, %v258_v5  ;;  %v1851_v5 = vrot.slane %v1831_v54, %v422_v53 }
  0x18   : > { %303 = vmatpush1.bf16.msra.mxu0 %v297_v6  ;;  %v403_v44 = vcombine.high %v402_v43, %v402_v43 }
  0x1b   : > { %1456 = vmatmul.mubr.msk.bf16.vlgmr.msra.gmra.mrb[0].mxu0 %vm288_vm1, %v1517_v7 }
  0x1c   : > { %344 = vmatprep.mubr.bf16.mxu0 %v1720_v0 }
  0x23   : > { %1457 = vmatmul.mubr.msk.bf16.gmra.mrb[4].mxu0 %vm288_vm1, %v1518_v8 }
  0x8e   : > { %v273_v11 = vpop.permute.xlu0 %272 }
  0x8f   : > { %v278_v22 = vpop.permute.xlu1 %277 }
  0xee   : > { %v1800_v10 = vpop.f32.mrb[0].mxu0 }
  0xef   : > { %2607 = vst [vmem:[#allocation3_spill] sm:$0xff] %v1800_v10  ;;  %v1802_v12 = vpop.f32.mrb[1].mxu0 }
  0xf0   : > { %2608 = vst [vmem:[#allocation4_spill] sm:$0xff] %v1802_v12  ;;  %v340_v13 = vpop.f32.mrb[2].mxu0 }
  0xf1   : > { %v341_v14 = vadd.f32 %v340_v13, %v273_v11  ;;  %v342_v15 = vpop.f32.mrb[3].mxu0 }
  0xf2   : > { %v343_v16 = vadd.f32 %v342_v15, %v273_v11 }
  0xf4   : > { %v1495_v17 = vpack.i.bf16 %v343_v16, %v341_v14 }
  0xf6   : > { %1496 = vrot.lane.b32.xlu0 %v1495_v17, %s1721_s11  ;;  %v346_v18 = vpop.f32.mrb[4].mxu0 }
  0xf7   : > { %v348_v19 = vpop.f32.mrb[5].mxu0  ;;  %v347_v23 = vadd.f32 %v346_v18, %v278_v22 }
  0xf8   : > { %v350_v20 = vpop.f32.mrb[6].mxu0  ;;  %v349_v35 = vadd.f32 %v348_v19, %v278_v22 }
  0xf9   : > { %v351_v21 = vpop.f32.mrb[7].mxu0  ;;  %v393_v24 = vpack.c.bf16 %v347_v23, %v347_v23 }
  0xfa   : > { %v394_v36 = vpack.c.bf16 %v349_v35, %v349_v35 }
 0x114   : > { %489 = vxpose.xlu0.c.b16.start.end [1/1] (short) %v393_v24, 128 }
 0x139   : > { %404 = vrot.lane.b32.xlu0 %v402_v43, %s1721_s11 }
 0x13d   : > { %410 = vrot.lane.b32.xlu0 %v402_v43, %s1722_s12 }
 0x168   : > { %v1497_v27 = vpop.permute.xlu0 %1496 }
 0x169   : > { %v1499_v28 = vunpack.i.h.bf16 %v1497_v27  ;;  %v1498_v29 = vunpack.i.l.bf16 %v1497_v27 }
 0x16b   : > { %v365_v30 = vsel %vm363_vm2, %v1498_v29, %v1499_v28  ;;  %v367_v31 = vsel %vm363_vm2, %v1499_v28, %v1498_v29 }
 0x16c   : > { %v370_v32 = vmax.f32 %v341_v14, %v367_v31  ;;  %v371_v33 = vmax.f32 %v343_v16, %v365_v30 }
 0x16e   : > { %v1501_v34 = vpack.i.bf16 %v371_v33, %v370_v32 }
 0x170   : > { %1502 = vrot.lane.b32.xlu1 %v1501_v34, %s1722_s12 }
 0x17a   : > { %v497_v6 = vpop.trf.xlu0 }
 0x17e   : > { %v498_v7 = vpop.trf.xlu0 }
 0x182   : > { %v499_v8 = vpop.trf.xlu0 }
 0x186   : > { %v500_v9 = vpop.trf.xlu0 }
 0x18a   : > { %v501_v11 = vpop.trf.xlu0 }
 0x18e   : > { %v502_v14 = vpop.trf.xlu0 }
 0x192   : > { %v503_v17 = vpop.trf.xlu0 }
 0x193   : > { %505 = vxpose.xlu1.c.b16.start.end [1/1] (short) %v394_v36, 128 }
 0x196   : > { %v504_v20 = vpop.trf.xlu0 }
 0x1ab   : > { %v405_v24 = vpop.permute.xlu0 %404 }
 0x1af   : > { %v411_v31 = vpop.permute.xlu0 %410 }
 0x1b3   : > { %406 = vrot.lane.b32.xlu1 %v403_v44, %s1721_s11 }
 0x1b7   : > { %412 = vrot.lane.b32.xlu1 %v403_v44, %s1722_s12 }
 0x1e2   : > { %v1503_v45 = vpop.permute.xlu1 %1502 }
 0x1e3   : > { %v1505_v46 = vunpack.i.h.bf16 %v1503_v45  ;;  %v1504_v47 = vunpack.i.l.bf16 %v1503_v45 }
 0x1e5   : > { %v382_v48 = vsel %vm2572_vm3, %v1504_v47, %v1505_v46  ;;  %v384_v49 = vsel %vm2572_vm3, %v1505_v46, %v1504_v47  ;;  %v1724_v46 = vmov -1e+30  }
 0x1e6   : > { %v388_v50 = vmax.f32 %v371_v33, %v382_v48  ;;  %v387_v51 = vmax.f32 %v370_v32, %v384_v49 }
 0x1e8   : > { %v392_v57 = vpack.c.bf16 %v388_v50, %v388_v50  ;;  %v391_v58 = vpack.c.bf16 %v387_v51, %v387_v51 }
 0x1ea   : > { %1458 = vmatprep.subr.msk.bf16.mxu1 %vm2571_vm4, %v392_v57  ;;  %v572_v2 = vsel %vm2571_vm4, %v391_v58, 0 }
 0x1eb   : > { %578 = vmatpush1.bf16.msra.mxu1 %v572_v2 }
 0x1ee   : > { %1459 = vmatmul.mubr.msk.bf16.vlgmr.msra.gmra.mrb[0].mxu1 %vm521_vm5, %v497_v6 }
 0x1ef   : > { %619 = vmatprep.mubr.bf16.mxu1 %v1720_v0 }
 0x1f6   : > { %1460 = vmatmul.mubr.msk.bf16.gmra.mrb[4].mxu1 %vm521_vm5, %v498_v7 }
 0x1f7   : > { %629 = vmatprep.mubr.bf16.mxu1 %v1720_v0 }
 0x1f9   : > { %v513_v13 = vpop.trf.xlu1 }
 0x1fd   : > { %v514_v15 = vpop.trf.xlu1 }
 0x1fe   : > { %1461 = vmatmul.mubr.msk.bf16.gmra.mrb[8].mxu1 %vm521_vm5, %v499_v8 }
 0x1ff   : > { %639 = vmatprep.mubr.bf16.mxu1 %v1720_v0 }
 0x201   : > { %v515_v16 = vpop.trf.xlu1 }
 0x205   : > { %v516_v18 = vpop.trf.xlu1 }
 0x206   : > { %1462 = vmatmul.mubr.msk.bf16.gmra.mrb[12].mxu1 %vm521_vm5, %v500_v9 }
 0x207   : > { %649 = vmatprep.mubr.bf16.mxu1 %v1720_v0 }
 0x209   : > { %v517_v19 = vpop.trf.xlu1 }
 0x20d   : > { %v518_v21 = vpop.trf.xlu1 }
 0x20e   : > { %1463 = vmatmul.mubr.msk.bf16.gmra.mrb[16].mxu1 %vm521_vm5, %v501_v11 }
 0x20f   : > { %659 = vmatprep.mubr.bf16.mxu1 %v1720_v0 }
 0x211   : > { %v519_v22 = vpop.trf.xlu1 }
 0x215   : > { %v520_v23 = vpop.trf.xlu1 }
 0x216   : > { %1464 = vmatmul.mubr.msk.bf16.gmra.mrb[20].mxu1 %vm521_vm5, %v502_v14 }
 0x217   : > { %669 = vmatprep.mubr.bf16.mxu1 %v1720_v0 }
 0x21e   : > { %1465 = vmatmul.mubr.msk.bf16.gmra.mrb[24].mxu1 %vm521_vm5, %v503_v17 }
 0x21f   : > { %679 = vmatprep.mubr.bf16.mxu1 %v1720_v0 }
 0x225   : > { %v407_v25 = vpop.permute.xlu1 %406 }
 0x226   : > { %1466 = vmatmul.mubr.msk.bf16.gmra.mrb[28].mxu1 %vm521_vm5, %v504_v20  ;;  %v408_v27 = vsel %vm363_vm2, %v405_v24, %v407_v25  ;;  %v409_v28 = vsel %vm363_vm2, %v407_v25, %v405_v24 }
 0x227   : > { %689 = vmatprep.mubr.bf16.mxu1 %v1720_v0  ;;  %v426_v29 = vshra.s32 %v409_v28, 1  ;;  %v427_v30 = vshra.s32 %v408_v27, 1  ;;  %vm1876_vm6 = vcmp.eq.s32.totalorder %v409_v28, %v419_v59  ;;  %vm425_vm7 = vcmp.eq.s32.totalorder %v408_v27, %v1836_v60 }
 0x229   : > { %vm437_vm8 = vcmp.eq.s32.totalorder %v426_v29, %v432_v61  ;;  %vm438_vm9 = vcmp.eq.s32.totalorder %v427_v30, %v436_v62  ;;  %v413_v33 = vpop.permute.xlu1 %412 }
 0x22a   : > { %v439_v34 = vsel %vm437_vm8, 1, %v1720_v0  ;;  %v440_v35 = vsel %vm438_vm9, 1, %v1720_v0  ;;  %v414_v36 = vsel %vm2572_vm3, %v411_v31, %v413_v33  ;;  %v415_v37 = vsel %vm2572_vm3, %v413_v33, %v411_v31 }
 0x22b   : > { %v441_v38 = vrot.slane %v439_v34, 1  ;;  %v442_v39 = vrot.slane %v440_v35, 1  ;;  %vm455_vm10 = vcmp.eq.s32.totalorder %v415_v37, %v1841_v63  ;;  %vm456_vm11 = vcmp.eq.s32.totalorder %v414_v36, %v1844_v1 }
 0x22c   : > { %v457_v40 = vsel %vm455_vm10, 1, %v1720_v0  ;;  %v458_v41 = vsel %vm456_vm11, 1, %v1720_v0  ;;  %v465_v42 = vshra.s32 %v415_v37, 1  ;;  %v466_v43 = vshra.s32 %v414_v36, 1 }
 0x22d   : > { %vm443_vm12 = vcmp.ne.s32.totalorder %v441_v38, 0  ;;  %vm444_vm13 = vcmp.ne.s32.totalorder %v442_v39, 0  ;;  %v459_v44 = vrot.slane %v457_v40, 1  ;;  %v460_v45 = vrot.slane %v458_v41, 1 }
 0x22e   : > { %1467 = vmatmul.mubr.msk.bf16.gmra.mrb[32].mxu1 %vm521_vm5, %v513_v13  ;;  %vm445_vm14 = vmand %vm1876_vm6, %vm443_vm12  ;;  %vm475_vm8 = vcmp.eq.s32.totalorder %v465_v42, %v470_v4  ;;  %vm476_vm10 = vcmp.eq.s32.totalorder %v466_v43, %v1851_v5 }
 0x22f   : > { %699 = vmatprep.mubr.bf16.mxu1 %v1720_v0  ;;  %vm446_vm15 = vmand %vm425_vm7, %vm444_vm13  ;;  %vm461_vm0 = vcmp.ne.s32.totalorder %v459_v44, 0  ;;  %vm462_vm1 = vcmp.ne.s32.totalorder %v460_v45, 0 }
 0x230   : > { %vm463_vm9 = vmand %vm445_vm14, %vm461_vm0 }
 0x231   : > { %vm464_vm11 = vmand %vm446_vm15, %vm462_vm1 }
 0x232   : > { %vm477_vm4 = vmand %vm463_vm9, %vm475_vm8 }
 0x233   : > { %vm478_vm3 = vmand %vm464_vm11, %vm476_vm10  ;;  %v479_v47 = vsel %vm477_vm4, 0.0, %v1724_v46  ;;  %vm2679_vm4 = vcmask 1043456  }
 0x234   : > { %v480_v48 = vsel %vm478_vm3, 0.0, %v1724_v46  ;;  %v1903_v49 = vrot.slane %v479_v47, %v1828_v52  ;;  %vm2680_vm6 = vmmov %vm2679_vm4 }
 0x235   : > { %v1906_v50 = vrot.slane %v480_v48, %v1828_v52 }
 0x236   : > { %1468 = vmatmul.mubr.msk.bf16.gmra.mrb[36].mxu1 %vm521_vm5, %v514_v15 }
 0x237   : > { %709 = vmatprep.mubr.bf16.mxu1 %v1720_v0 }
 0x23e   : > { %1469 = vmatmul.mubr.msk.bf16.gmra.mrb[40].mxu1 %vm521_vm5, %v515_v16 }
 0x23f   : > { %719 = vmatprep.mubr.bf16.mxu1 %v1720_v0 }
 0x246   : > { %1470 = vmatmul.mubr.msk.bf16.gmra.mrb[44].mxu1 %vm521_vm5, %v516_v18 }
 0x247   : > { %729 = vmatprep.mubr.bf16.mxu1 %v1720_v0 }
 0x24e   : > { %1471 = vmatmul.mubr.msk.bf16.gmra.mrb[48].mxu1 %vm521_vm5, %v517_v19 }
 0x24f   : > { %739 = vmatprep.mubr.bf16.mxu1 %v1720_v0 }
 0x256   : > { %1472 = vmatmul.mubr.msk.bf16.gmra.mrb[52].mxu1 %vm521_vm5, %v518_v21 }
 0x257   : > { %749 = vmatprep.mubr.bf16.mxu1 %v1720_v0 }
 0x25e   : > { %1473 = vmatmul.mubr.msk.bf16.gmra.mrb[56].mxu1 %vm521_vm5, %v519_v22 }
 0x25f   : > { %759 = vmatprep.mubr.bf16.mxu1 %v1720_v0 }
 0x266   : > { %1474 = vmatmul.mubr.msk.bf16.gmra.mrb[60].mxu1 %vm521_vm5, %v520_v23 }
 0x267   : > { %1373 = vmatprep.mubr.bf16.mxu1 %v1720_v0 }
 0x2c1   : > { %v611_v51 = vpop.f32.mrb[0].mxu1 }
 0x2c2   : > { %v1919_v52 = vadd.f32 %v611_v51, %v1903_v49  ;;  %v613_v53 = vpop.f32.mrb[1].mxu1 }
 0x2c3   : > { %v1922_v54 = vadd.f32 %v613_v53, %v1906_v50  ;;  %v615_v55 = vpop.f32.mrb[2].mxu1 }
 0x2c4   : > { %v1925_v56 = vadd.f32 %v615_v55, %v1903_v49  ;;  %v617_v57 = vpop.f32.mrb[3].mxu1 }
 0x2c5   : > { %v1928_v58 = vadd.f32 %v617_v57, %v1906_v50  ;;  %v770_v59 = vmax.f32 %v1919_v52, %v1922_v54 }
 0x2c7   : > { %771 = vmax.xlane.f32.xlu0 %v770_v59  ;;  %v773_v0 = vmax.f32 %v1925_v56, %v1928_v58 }
 0x2c9   : > { %v621_v60 = vpop.f32.mrb[4].mxu1  ;;  %774 = vmax.xlane.f32.xlu1 %v773_v0 }
 0x2ca   : > { %v1935_v61 = vadd.f32 %v621_v60, %v1903_v49  ;;  %v623_v62 = vpop.f32.mrb[5].mxu1 }
 0x2cb   : > { %v1938_v63 = vadd.f32 %v623_v62, %v1906_v50  ;;  %v625_v1 = vpop.f32.mrb[6].mxu1 }
 0x2cc   : > { %v627_v2 = vpop.f32.mrb[7].mxu1  ;;  %v1941_v4 = vadd.f32 %v625_v1, %v1903_v49 }
 0x2cd   : > { %v1944_v5 = vadd.f32 %v627_v2, %v1906_v50  ;;  %v776_v6 = vmax.f32 %v1935_v61, %v1938_v63 }
 0x2cf   : > { %777 = vmax.xlane.f32.xlu0 %v776_v6  ;;  %v779_v8 = vmax.f32 %v1941_v4, %v1944_v5 }
 0x2d1   : > { %v631_v7 = vpop.f32.mrb[8].mxu1 }
 0x2d2   : > { %v1951_v9 = vadd.f32 %v631_v7, %v1903_v49  ;;  %v633_v11 = vpop.f32.mrb[9].mxu1 }
 0x2d3   : > { %v1954_v13 = vadd.f32 %v633_v11, %v1906_v50  ;;  %v635_v14 = vpop.f32.mrb[10].mxu1  ;;  %780 = vmax.xlane.f32.xlu0 %v779_v8 }
 0x2d4   : > { %v1957_v15 = vadd.f32 %v635_v14, %v1903_v49  ;;  %v637_v16 = vpop.f32.mrb[11].mxu1 }
 0x2d5   : > { %v1960_v17 = vadd.f32 %v637_v16, %v1906_v50  ;;  %v782_v18 = vmax.f32 %v1951_v9, %v1954_v13 }
 0x2d7   : > { %783 = vmax.xlane.f32.xlu1 %v782_v18  ;;  %v785_v19 = vmax.f32 %v1957_v15, %v1960_v17 }
 0x2d9   : > { %v641_v20 = vpop.f32.mrb[12].mxu1  ;;  %786 = vmax.xlane.f32.xlu0 %v785_v19 }
 0x2da   : > { %v1967_v21 = vadd.f32 %v641_v20, %v1903_v49  ;;  %v643_v22 = vpop.f32.mrb[13].mxu1 }
 0x2db   : > { %v1970_v23 = vadd.f32 %v643_v22, %v1906_v50  ;;  %v645_v24 = vpop.f32.mrb[14].mxu1 }
 0x2dc   : > { %v1973_v25 = vadd.f32 %v645_v24, %v1903_v49  ;;  %v647_v27 = vpop.f32.mrb[15].mxu1 }
 0x2dd   : > { %v1976_v28 = vadd.f32 %v647_v27, %v1906_v50  ;;  %v788_v29 = vmax.f32 %v1967_v21, %v1970_v23 }
 0x2df   : > { %789 = vmax.xlane.f32.xlu1 %v788_v29  ;;  %v791_v30 = vmax.f32 %v1973_v25, %v1976_v28 }
 0x2e1   : > { %v651_v31 = vpop.f32.mrb[16].mxu1  ;;  %792 = vmax.xlane.f32.xlu0 %v791_v30 }
 0x2e2   : > { %v1983_v32 = vadd.f32 %v651_v31, %v1903_v49  ;;  %v653_v33 = vpop.f32.mrb[17].mxu1 }
 0x2e3   : > { %v1986_v34 = vadd.f32 %v653_v33, %v1906_v50  ;;  %v655_v35 = vpop.f32.mrb[18].mxu1 }
 0x2e4   : > { %v1989_v36 = vadd.f32 %v655_v35, %v1903_v49  ;;  %v657_v37 = vpop.f32.mrb[19].mxu1 }
 0x2e5   : > { %v1992_v38 = vadd.f32 %v657_v37, %v1906_v50  ;;  %v794_v39 = vmax.f32 %v1983_v32, %v1986_v34 }
 0x2e7   : > { %795 = vmax.xlane.f32.xlu1 %v794_v39  ;;  %v797_v40 = vmax.f32 %v1989_v36, %v1992_v38 }
 0x2e9   : > { %v661_v41 = vpop.f32.mrb[20].mxu1  ;;  %798 = vmax.xlane.f32.xlu0 %v797_v40 }
 0x2ea   : > { %v1999_v42 = vadd.f32 %v661_v41, %v1903_v49  ;;  %v663_v43 = vpop.f32.mrb[21].mxu1 }
 0x2eb   : > { %v2002_v44 = vadd.f32 %v663_v43, %v1906_v50  ;;  %v665_v45 = vpop.f32.mrb[22].mxu1 }
 0x2ec   : > { %v2005_v46 = vadd.f32 %v665_v45, %v1903_v49  ;;  %v667_v47 = vpop.f32.mrb[23].mxu1 }
 0x2ed   : > { %v2008_v48 = vadd.f32 %v667_v47, %v1906_v50  ;;  %v800_v51 = vmax.f32 %v1999_v42, %v2002_v44 }
 0x2ef   : > { %801 = vmax.xlane.f32.xlu1 %v800_v51  ;;  %v803_v53 = vmax.f32 %v2005_v46, %v2008_v48 }
 0x2f1   : > { %v671_v55 = vpop.f32.mrb[24].mxu1  ;;  %804 = vmax.xlane.f32.xlu0 %v803_v53 }
 0x2f2   : > { %v2015_v57 = vadd.f32 %v671_v55, %v1903_v49  ;;  %v673_v59 = vpop.f32.mrb[25].mxu1 }
 0x2f3   : > { %v2018_v0 = vadd.f32 %v673_v59, %v1906_v50  ;;  %v675_v60 = vpop.f32.mrb[26].mxu1 }
 0x2f4   : > { %v2021_v62 = vadd.f32 %v675_v60, %v1903_v49  ;;  %v677_v1 = vpop.f32.mrb[27].mxu1 }
 0x2f5   : > { %v2024_v2 = vadd.f32 %v677_v1, %v1906_v50  ;;  %v806_v6 = vmax.f32 %v2015_v57, %v2018_v0 }
 0x2f7   : > { %807 = vmax.xlane.f32.xlu1 %v806_v6  ;;  %v809_v7 = vmax.f32 %v2021_v62, %v2024_v2 }
 0x2f9   : > { %v681_v8 = vpop.f32.mrb[28].mxu1  ;;  %810 = vmax.xlane.f32.xlu0 %v809_v7 }
 0x2fa   : > { %v2031_v11 = vadd.f32 %v681_v8, %v1903_v49  ;;  %v683_v14 = vpop.f32.mrb[29].mxu1 }
 0x2fb   : > { %v2034_v16 = vadd.f32 %v683_v14, %v1906_v50  ;;  %v685_v18 = vpop.f32.mrb[30].mxu1 }
 0x2fc   : > { %v2037_v19 = vadd.f32 %v685_v18, %v1903_v49  ;;  %v687_v20 = vpop.f32.mrb[31].mxu1 }
 0x2fd   : > { %v2040_v22 = vadd.f32 %v687_v20, %v1906_v50  ;;  %v812_v24 = vmax.f32 %v2031_v11, %v2034_v16 }
 0x2ff   : > { %813 = vmax.xlane.f32.xlu1 %v812_v24  ;;  %v815_v27 = vmax.f32 %v2037_v19, %v2040_v22 }
 0x301   : > { %v691_v29 = vpop.f32.mrb[32].mxu1  ;;  %816 = vmax.xlane.f32.xlu0 %v815_v27 }
 0x302   : > { %v2047_v30 = vadd.f32 %v691_v29, %v1903_v49  ;;  %v693_v31 = vpop.f32.mrb[33].mxu1 }
 0x303   : > { %v2050_v33 = vadd.f32 %v693_v31, %v1906_v50  ;;  %v695_v35 = vpop.f32.mrb[34].mxu1 }
 0x304   : > { %v2053_v37 = vadd.f32 %v695_v35, %v1903_v49  ;;  %v697_v39 = vpop.f32.mrb[35].mxu1 }
 0x305   : > { %v2056_v40 = vadd.f32 %v697_v39, %v1906_v50  ;;  %v818_v41 = vmax.f32 %v2047_v30, %v2050_v33 }
 0x307   : > { %819 = vmax.xlane.f32.xlu1 %v818_v41  ;;  %v821_v43 = vmax.f32 %v2053_v37, %v2056_v40 }
 0x309   : > { %v701_v45 = vpop.f32.mrb[36].mxu1  ;;  %822 = vmax.xlane.f32.xlu0 %v821_v43 }
 0x30a   : > { %v2063_v47 = vadd.f32 %v701_v45, %v1903_v49  ;;  %v703_v51 = vpop.f32.mrb[37].mxu1 }
 0x30b   : > { %v2066_v53 = vadd.f32 %v703_v51, %v1906_v50  ;;  %v705_v55 = vpop.f32.mrb[38].mxu1 }
 0x30c   : > { %v2069_v59 = vadd.f32 %v705_v55, %v1903_v49  ;;  %v707_v60 = vpop.f32.mrb[39].mxu1 }
 0x30d   : > { %v2072_v1 = vadd.f32 %v707_v60, %v1906_v50  ;;  %v824_v6 = vmax.f32 %v2063_v47, %v2066_v53 }
 0x30f   : > { %825 = vmax.xlane.f32.xlu1 %v824_v6  ;;  %v827_v7 = vmax.f32 %v2069_v59, %v2072_v1 }
 0x311   : > { %v711_v8 = vpop.f32.mrb[40].mxu1  ;;  %828 = vmax.xlane.f32.xlu0 %v827_v7 }
 0x312   : > { %v2079_v14 = vadd.f32 %v711_v8, %v1903_v49  ;;  %v713_v18 = vpop.f32.mrb[41].mxu1 }
 0x313   : > { %v2082_v20 = vadd.f32 %v713_v18, %v1906_v50  ;;  %v715_v24 = vpop.f32.mrb[42].mxu1 }
 0x314   : > { %v2085_v27 = vadd.f32 %v715_v24, %v1903_v49  ;;  %v717_v29 = vpop.f32.mrb[43].mxu1 }
 0x315   : > { %v2088_v31 = vadd.f32 %v717_v29, %v1906_v50  ;;  %v830_v35 = vmax.f32 %v2079_v14, %v2082_v20 }
 0x316   : > { %2612 = vst [vmem:[#allocation6_spill] sm:$0xff] %v2085_v27 }
 0x317   : > { %2613 = vst [vmem:[#allocation7_spill] sm:$0xff] %v2088_v31  ;;  %831 = vmax.xlane.f32.xlu1 %v830_v35  ;;  %v833_v39 = vmax.f32 %v2085_v27, %v2088_v31 }
 0x319   : > { %v721_v41 = vpop.f32.mrb[44].mxu1  ;;  %834 = vmax.xlane.f32.xlu0 %v833_v39 }
 0x31a   : > { %v2095_v43 = vadd.f32 %v721_v41, %v1903_v49  ;;  %v723_v45 = vpop.f32.mrb[45].mxu1 }
 0x31b   : > { %v2098_v51 = vadd.f32 %v723_v45, %v1906_v50  ;;  %v725_v55 = vpop.f32.mrb[46].mxu1 }
 0x31c   : > { %2614 = vst [vmem:[#allocation8_spill] sm:$0xff] %v2095_v43  ;;  %v2101_v60 = vadd.f32 %v725_v55, %v1903_v49  ;;  %v727_v6 = vpop.f32.mrb[47].mxu1 }
 0x31d   : > { %2615 = vst [vmem:[#allocation9_spill] sm:$0xff] %v2098_v51  ;;  %v2104_v7 = vadd.f32 %v727_v6, %v1906_v50  ;;  %v836_v8 = vmax.f32 %v2095_v43, %v2098_v51 }
 0x31e   : > { %2616 = vst [vmem:[#allocation10_spill] sm:$0xff] %v2101_v60 }
 0x31f   : > { %2617 = vst [vmem:[#allocation11_spill] sm:$0xff] %v2104_v7  ;;  %837 = vmax.xlane.f32.xlu1 %v836_v8  ;;  %v839_v18 = vmax.f32 %v2101_v60, %v2104_v7 }
 0x321   : > { %v731_v24 = vpop.f32.mrb[48].mxu1  ;;  %840 = vmax.xlane.f32.xlu0 %v839_v18 }
 0x322   : > { %v2111_v29 = vadd.f32 %v731_v24, %v1903_v49  ;;  %v733_v35 = vpop.f32.mrb[49].mxu1 }
 0x323   : > { %v2114_v39 = vadd.f32 %v733_v35, %v1906_v50  ;;  %v735_v41 = vpop.f32.mrb[50].mxu1 }
 0x324   : > { %2618 = vst [vmem:[#allocation12_spill] sm:$0xff] %v2111_v29  ;;  %v2117_v45 = vadd.f32 %v735_v41, %v1903_v49  ;;  %v737_v55 = vpop.f32.mrb[51].mxu1 }
 0x325   : > { %2619 = vst [vmem:[#allocation13_spill] sm:$0xff] %v2114_v39  ;;  %v2120_v6 = vadd.f32 %v737_v55, %v1906_v50  ;;  %v842_v8 = vmax.f32 %v2111_v29, %v2114_v39 }
 0x326   : > { %2620 = vst [vmem:[#allocation14_spill] sm:$0xff] %v2117_v45 }
 0x327   : > { %2621 = vst [vmem:[#allocation15_spill] sm:$0xff] %v2120_v6  ;;  %843 = vmax.xlane.f32.xlu1 %v842_v8  ;;  %v845_v18 = vmax.f32 %v2117_v45, %v2120_v6 }
 0x329   : > { %v741_v24 = vpop.f32.mrb[52].mxu1  ;;  %846 = vmax.xlane.f32.xlu0 %v845_v18 }
 0x32a   : > { %v2127_v35 = vadd.f32 %v741_v24, %v1903_v49  ;;  %v743_v3 = vpop.f32.mrb[53].mxu1 }
 0x32b   : > { %v2130_v41 = vadd.f32 %v743_v3, %v1906_v50  ;;  %v745_v26 = vpop.f32.mrb[54].mxu1 }
 0x32c   : > { %2622 = vst [vmem:[#allocation16_spill] sm:$0xff] %v2127_v35  ;;  %v2133_v55 = vadd.f32 %v745_v26, %v1903_v49  ;;  %v747_v12 = vpop.f32.mrb[55].mxu1 }
 0x32d   : > { %2623 = vst [vmem:[#allocation17_spill] sm:$0xff] %v2130_v41  ;;  %v2136_v10 = vadd.f32 %v747_v12, %v1906_v50  ;;  %v848_v8 = vmax.f32 %v2127_v35, %v2130_v41 }
 0x32e   : > { %2624 = vst [vmem:[#allocation18_spill] sm:$0xff] %v2133_v55 }
 0x32f   : > { %2625 = vst [vmem:[#allocation19_spill] sm:$0xff] %v2136_v10  ;;  %849 = vmax.xlane.f32.xlu1 %v848_v8  ;;  %v851_v18 = vmax.f32 %v2133_v55, %v2136_v10 }
 0x331   : > { %v2142_v24 = vpop.f32.mrb[56].mxu1  ;;  %852 = vmax.xlane.f32.xlu0 %v851_v18 }
 0x332   : > { %v2144_v3 = vpop.f32.mrb[57].mxu1 }
 0x333   : > { %v2146_v6 = vpop.f32.mrb[58].mxu1 }
 0x334   : > { %v2148_v26 = vpop.f32.mrb[59].mxu1 }
 0x339   : > { %v2150_v45 = vpop.f32.mrb[60].mxu1 }
 0x33a   : > { %v2152_v12 = vpop.f32.mrb[61].mxu1 }
 0x33b   : > { %2626 = vst [vmem:[#allocation20_spill] sm:$0xff] %v2152_v12  ;;  %v2154_v39 = vpop.f32.mrb[62].mxu1 }
 0x33c   : > { %v2156_v41 = vpop.f32.mrb[63].mxu1 }
 0x354   : > { %v772_v8 = vpop.xlane.xlu0 %771 }
 0x355   : > { %v866_v10 = vsub.f32 %v1919_v52, %v772_v8  ;;  %v867_v55 = vsub.f32 %v1922_v54, %v772_v8 }
 0x356   : > { %v775_v18 = vpop.xlane.xlu1 %774 }
 0x357   : > { %v930_v35 = vmul.f32 1.442695, %v866_v10  ;;  %v932_v29 = vmul.f32 1.442695, %v867_v55  ;;  %v868_v7 = vsub.f32 %v1925_v56, %v775_v18  ;;  %v869_v60 = vsub.f32 %v1928_v58, %v775_v18 }
 0x359   : > { %1519 = vpow2.f32 %v930_v35  ;;  %v934_v51 = vmul.f32 1.442695, %v868_v7  ;;  %v936_v43 = vmul.f32 1.442695, %v869_v60 }
 0x35a   : > { %1521 = vpow2.f32 %v932_v29 }
 0x35b   : > { %1523 = vpow2.f32 %v934_v51 }
 0x35c   : > { %1525 = vpow2.f32 %v936_v43  ;;  %v778_v31 = vpop.xlane.xlu0 %777 }
 0x35d   : > { %v870_v27 = vsub.f32 %v1935_v61, %v778_v31  ;;  %v871_v52 = vsub.f32 %v1938_v63, %v778_v31 }
 0x35f   : > { %v938_v12 = vmul.f32 1.442695, %v870_v27  ;;  %v940_v54 = vmul.f32 1.442695, %v871_v52 }
 0x360   : > { %v781_v8 = vpop.xlane.xlu0 %780 }
 0x361   : > { %1527 = vpow2.f32 %v938_v12  ;;  %v872_v10 = vsub.f32 %v1941_v4, %v781_v8  ;;  %v873_v56 = vsub.f32 %v1944_v5, %v781_v8 }
 0x362   : > { %1529 = vpow2.f32 %v940_v54 }
 0x363   : > { %v2166_v58 = vpop.eup %1519  ;;  %v942_v60 = vmul.f32 1.442695, %v872_v10  ;;  %v944_v7 = vmul.f32 1.442695, %v873_v56 }
 0x364   : > { %v2168_v51 = vpop.eup %1521  ;;  %v784_v43 = vpop.xlane.xlu1 %783 }
 0x365   : > { %v2170_v29 = vpop.eup %1523  ;;  %1531 = vpow2.f32 %v942_v60  ;;  %v874_v61 = vsub.f32 %v1951_v9, %v784_v43  ;;  %v875_v63 = vsub.f32 %v1954_v13, %v784_v43  ;;  %v1058_v4 = vadd.f32 %v2168_v51, %v2166_v58 }
 0x366   : > { %v2176_v27 = vpop.eup %1525  ;;  %1533 = vpow2.f32 %v944_v7  ;;  %v787_v35 = vpop.xlane.xlu0 %786 }
 0x367   : > { %v946_v5 = vmul.f32 1.442695, %v874_v61  ;;  %v948_v31 = vmul.f32 1.442695, %v875_v63  ;;  %1059 = vadd.xlane.f32.xlu1 %v1058_v4  ;;  %v1061_v55 = vadd.f32 %v2176_v27, %v2170_v29  ;;  %v876_v9 = vsub.f32 %v1957_v15, %v787_v35 }
 0x368   : > { %v877_v18 = vsub.f32 %v1960_v17, %v787_v35  ;;  %v2196_v61 = vadd.f32 %v2142_v24, %v1903_v49  ;;  %v2200_v17 = vadd.f32 %v2144_v3, %v1906_v50  ;;  %v2212_v3 = vadd.f32 %v2146_v6, %v1903_v49 }
 0x369   : > { %1535 = vpow2.f32 %v946_v5  ;;  %1062 = vadd.xlane.f32.xlu0 %v1061_v55  ;;  %v950_v10 = vmul.f32 1.442695, %v876_v9  ;;  %v2216_v55 = vadd.f32 %v2148_v26, %v1906_v50  ;;  %v2226_v26 = vadd.f32 %v2154_v39, %v1903_v49 }
 0x36a   : > { %1537 = vpow2.f32 %v948_v31  ;;  %v952_v7 = vmul.f32 1.442695, %v877_v18 }
 0x36b   : > { %v2180_v12 = vpop.eup %1527  ;;  %1539 = vpow2.f32 %v950_v10  ;;  %v2230_v10 = vadd.f32 %v2156_v41, %v1906_v50 }
 0x36c   : > { %v2183_v13 = vpop.eup %1529  ;;  %v790_v52 = vpop.xlane.xlu1 %789  ;;  %1541 = vpow2.f32 %v952_v7 }
 0x36d   : > { %v1064_v54 = vadd.f32 %v2183_v13, %v2180_v12  ;;  %v878_v56 = vsub.f32 %v1967_v21, %v790_v52  ;;  %v879_v43 = vsub.f32 %v1970_v23, %v790_v52  ;;  %v863_v39 = vmax.f32 %v2226_v26, %v2230_v10 }
 0x36e   : > { %v793_v15 = vpop.xlane.xlu0 %792 }
 0x36f   : > { %v2188_v8 = vpop.eup %1531  ;;  %1065 = vadd.xlane.f32.xlu1 %v1064_v54  ;;  %v954_v21 = vmul.f32 1.442695, %v878_v56  ;;  %v880_v5 = vsub.f32 %v1973_v25, %v793_v15  ;;  %v956_v31 = vmul.f32 1.442695, %v879_v43  ;;  %v881_v24 = vsub.f32 %v1976_v28, %v793_v15 }
 0x370   : > { %v2191_v60 = vpop.eup %1533  ;;  %v854_v25 = vmax.f32 %v2196_v61, %v2200_v17  ;;  %v857_v56 = vmax.f32 %v2212_v3, %v2216_v55 }
 0x371   : > { %v1067_v63 = vadd.f32 %v2191_v60, %v2188_v8  ;;  %1543 = vpow2.f32 %v954_v21  ;;  %v958_v18 = vmul.f32 1.442695, %v880_v5  ;;  %v960_v28 = vmul.f32 1.442695, %v881_v24 }
 0x372   : > { %1545 = vpow2.f32 %v956_v31 }
 0x373   : > { %v2204_v4 = vpop.eup %1535  ;;  %1068 = vadd.xlane.f32.xlu0 %v1067_v63  ;;  %1547 = vpow2.f32 %v958_v18 }
 0x374   : > { %v2207_v23 = vpop.eup %1537  ;;  %v796_v35 = vpop.xlane.xlu1 %795  ;;  %1549 = vpow2.f32 %v960_v28 }
 0x375   : > { %v1070_v9 = vadd.f32 %v2207_v23, %v2204_v4  ;;  %v882_v52 = vsub.f32 %v1983_v32, %v796_v35  ;;  %v883_v6 = vsub.f32 %v1986_v34, %v796_v35  ;;  %v2236_v63 = vpop.eup %1539 }
 0x376   : > { %v799_v54 = vpop.xlane.xlu0 %798  ;;  %v2240_v41 = vpop.eup %1541 }
 0x377   : > { %1071 = vadd.xlane.f32.xlu1 %v1070_v9  ;;  %855 = vmax.xlane.f32.xlu0 %v854_v25  ;;  %v962_v32 = vmul.f32 1.442695, %v882_v52  ;;  %v884_v7 = vsub.f32 %v1989_v36, %v799_v54  ;;  %v964_v43 = vmul.f32 1.442695, %v883_v6  ;;  %v885_v34 = vsub.f32 %v1992_v38, %v799_v54  ;;  %v262_v54 = vld [vmem:[%s2566_s2] sm:$0xff] }
 0x378   : > { %v1073_v38 = vadd.f32 %v2240_v41, %v2236_v63 }
 0x379   : > { %1551 = vpow2.f32 %v962_v32  ;;  %v966_v21 = vmul.f32 1.442695, %v884_v7  ;;  %v968_v36 = vmul.f32 1.442695, %v885_v34 }
 0x37a   : > { %1553 = vpow2.f32 %v964_v43 }
 0x37b   : > { %858 = vmax.xlane.f32.xlu0 %v857_v56  ;;  %v2244_v35 = vpop.eup %1543  ;;  %1555 = vpow2.f32 %v966_v21 }
 0x37c   : > { %v802_v15 = vpop.xlane.xlu1 %801  ;;  %v2248_v9 = vpop.eup %1545  ;;  %1557 = vpow2.f32 %v968_v36 }
 0x37d   : > { %v886_v5 = vsub.f32 %v1999_v42, %v802_v15  ;;  %v887_v31 = vsub.f32 %v2002_v44, %v802_v15  ;;  %v2252_v6 = vpop.eup %1547  ;;  %v1076_v44 = vadd.f32 %v2248_v9, %v2244_v35 }
 0x37e   : > { %v805_v24 = vpop.xlane.xlu0 %804  ;;  %v2259_v56 = vpop.eup %1549 }
 0x37f   : > { %864 = vmax.xlane.f32.xlu0 %v863_v39  ;;  %v970_v25 = vmul.f32 1.442695, %v886_v5  ;;  %v888_v18 = vsub.f32 %v2005_v46, %v805_v24  ;;  %v972_v42 = vmul.f32 1.442695, %v887_v31  ;;  %v889_v52 = vsub.f32 %v2008_v48, %v805_v24 }
 0x380   : > { %v1079_v15 = vadd.f32 %v2259_v56, %v2252_v6 }
 0x381   : > { %1559 = vpow2.f32 %v970_v25  ;;  %v974_v32 = vmul.f32 1.442695, %v888_v18  ;;  %v976_v48 = vmul.f32 1.442695, %v889_v52 }
 0x382   : > { %1561 = vpow2.f32 %v972_v42 }
 0x383   : > { %1074 = vadd.xlane.f32.xlu0 %v1073_v38  ;;  %v2263_v34 = vpop.eup %1551  ;;  %1563 = vpow2.f32 %v974_v32 }
 0x384   : > { %v808_v28 = vpop.xlane.xlu1 %807  ;;  %v2267_v39 = vpop.eup %1553  ;;  %1565 = vpow2.f32 %v976_v48 }
 0x385   : > { %v890_v46 = vsub.f32 %v2015_v57, %v808_v28  ;;  %v891_v43 = vsub.f32 %v2018_v0, %v808_v28  ;;  %v2271_v24 = vpop.eup %1555  ;;  %v1082_v0 = vadd.f32 %v2267_v39, %v2263_v34 }
 0x386   : > { %v811_v7 = vpop.xlane.xlu0 %810  ;;  %v2275_v38 = vpop.eup %1557 }
 0x387   : > { %1077 = vadd.xlane.f32.xlu0 %v1076_v44  ;;  %v892_v21 = vsub.f32 %v2021_v62, %v811_v7  ;;  %v978_v5 = vmul.f32 1.442695, %v890_v46  ;;  %v893_v57 = vsub.f32 %v2024_v2, %v811_v7  ;;  %v980_v36 = vmul.f32 1.442695, %v891_v43 }
 0x388   : > { %267 = vperm.xlu1 %1500, %v262_v54   ;;  %v1085_v28 = vadd.f32 %v2275_v38, %v2271_v24 }
 0x389   : > { %v982_v25 = vmul.f32 1.442695, %v892_v21  ;;  %1567 = vpow2.f32 %v978_v5  ;;  %v984_v18 = vmul.f32 1.442695, %v893_v57 }
 0x38a   : > { %1569 = vpow2.f32 %v980_v36 }
 0x38b   : > { %1080 = vadd.xlane.f32.xlu0 %v1079_v15  ;;  %v2279_v52 = vpop.eup %1559  ;;  %1571 = vpow2.f32 %v982_v25 }
 0x38c   : > { %v814_v31 = vpop.xlane.xlu1 %813  ;;  %v2283_v44 = vpop.eup %1561  ;;  %1573 = vpow2.f32 %v984_v18 }
 0x38d   : > { %v894_v62 = vsub.f32 %v2031_v11, %v814_v31  ;;  %v895_v2 = vsub.f32 %v2034_v16, %v814_v31  ;;  %v2287_v48 = vpop.eup %1563  ;;  %v1088_v16 = vadd.f32 %v2283_v44, %v2279_v52 }
 0x38e   : > { %v817_v42 = vpop.xlane.xlu0 %816  ;;  %v2291_v43 = vpop.eup %1565 }
 0x38f   : > { %1083 = vadd.xlane.f32.xlu0 %v1082_v0  ;;  %v986_v54 = vmul.f32 1.442695, %v894_v62  ;;  %v896_v32 = vsub.f32 %v2037_v19, %v817_v42  ;;  %v988_v46 = vmul.f32 1.442695, %v895_v2  ;;  %v897_v11 = vsub.f32 %v2040_v22, %v817_v42 }
 0x390   : > { %v1091_v0 = vadd.f32 %v2291_v43, %v2287_v48 }
 0x391   : > { %1575 = vpow2.f32 %v986_v54  ;;  %v990_v5 = vmul.f32 1.442695, %v896_v32  ;;  %v992_v57 = vmul.f32 1.442695, %v897_v11 }
 0x392   : > { %1577 = vpow2.f32 %v988_v46 }
 0x393   : > { %1086 = vadd.xlane.f32.xlu0 %v1085_v28  ;;  %v2296_v36 = vpop.eup %1567  ;;  %1579 = vpow2.f32 %v990_v5 }
 0x394   : > { %v820_v7 = vpop.xlane.xlu1 %819  ;;  %v2301_v25 = vpop.eup %1569  ;;  %1581 = vpow2.f32 %v992_v57 }
 0x395   : > { %v898_v15 = vsub.f32 %v2047_v30, %v820_v7  ;;  %v899_v31 = vsub.f32 %v2050_v33, %v820_v7  ;;  %v2303_v62 = vpop.eup %1571  ;;  %v1094_v54 = vadd.f32 %v2301_v25, %v2296_v36 }
 0x396   : > { %v823_v21 = vpop.xlane.xlu0 %822  ;;  %v2305_v42 = vpop.eup %1573 }
 0x397   : > { %1089 = vadd.xlane.f32.xlu0 %v1088_v16  ;;  %v900_v19 = vsub.f32 %v2053_v37, %v823_v21  ;;  %v901_v22 = vsub.f32 %v2056_v40, %v823_v21  ;;  %v994_v30 = vmul.f32 1.442695, %v898_v15  ;;  %v996_v40 = vmul.f32 1.442695, %v899_v31 }
 0x398   : > { %v1097_v16 = vadd.f32 %v2305_v42, %v2303_v62 }
 0x399   : > { %v998_v18 = vmul.f32 1.442695, %v900_v19  ;;  %v1000_v37 = vmul.f32 1.442695, %v901_v22  ;;  %1583 = vpow2.f32 %v994_v30  ;;  %v2627_v30 = vld [vmem:[#allocation20_spill] sm:$0xff] }
 0x39b   : > { %1092 = vadd.xlane.f32.xlu0 %v1091_v0  ;;  %1585 = vpow2.f32 %v998_v18  ;;  %v2315_v15 = vpop.eup %1575  ;;  %v2329_v0 = vadd.f32 %v2150_v45, %v1903_v49  ;;  %v2333_v18 = vadd.f32 %v2627_v30, %v1906_v50 }
 0x39c   : > { %v826_v2 = vpop.xlane.xlu1 %825  ;;  %1587 = vpow2.f32 %v1000_v37  ;;  %v2317_v5 = vpop.eup %1577 }
 0x39d   : > { %v902_v28 = vsub.f32 %v2063_v47, %v826_v2  ;;  %v903_v33 = vsub.f32 %v2066_v53, %v826_v2  ;;  %1589 = vpow2.f32 %v996_v40  ;;  %v1100_v22 = vadd.f32 %v2317_v5, %v2315_v15 }
 0x39e   : > { %v829_v32 = vpop.xlane.xlu0 %828 }
 0x39f   : > { %v1002_v46 = vmul.f32 1.442695, %v902_v28  ;;  %1095 = vadd.xlane.f32.xlu0 %v1094_v54  ;;  %v904_v11 = vsub.f32 %v2069_v59, %v829_v32  ;;  %v905_v7 = vsub.f32 %v2072_v1, %v829_v32  ;;  %v1004_v47 = vmul.f32 1.442695, %v903_v33  ;;  %v2319_v59 = vpop.eup %1579 }
 0x3a0   : > { %v2325_v31 = vpop.eup %1581 }
 0x3a1   : > { %v1006_v53 = vmul.f32 1.442695, %v904_v11  ;;  %v1008_v21 = vmul.f32 1.442695, %v905_v7  ;;  %1591 = vpow2.f32 %v1002_v46  ;;  %v1103_v45 = vadd.f32 %v2325_v31, %v2319_v59 }
 0x3a2   : > { %v860_v11 = vmax.f32 %v2329_v0, %v2333_v18 }
 0x3a3   : > { %1593 = vpow2.f32 %v1006_v53  ;;  %1098 = vadd.xlane.f32.xlu0 %v1097_v16  ;;  %v2337_v54 = vpop.eup %1583 }
 0x3a4   : > { %1595 = vpow2.f32 %v1008_v21  ;;  %v832_v19 = vpop.xlane.xlu1 %831  ;;  %v2632_v21 = vld [vmem:[#allocation8_spill] sm:$0xff] }
 0x3a5   : > { %1597 = vpow2.f32 %v1004_v47  ;;  %v906_v1 = vsub.f32 %v2079_v14, %v832_v19  ;;  %v907_v57 = vsub.f32 %v2082_v20, %v832_v19  ;;  %v2628_v14 = vld [vmem:[#allocation6_spill] sm:$0xff]  ;;  %v2629_v20 = vld [vmem:[#allocation7_spill] sm:$0xff]  ;;  %v2339_v32 = vpop.eup %1585 }
 0x3a6   : > { %v835_v37 = vpop.xlane.xlu0 %834  ;;  %v2343_v50 = vpop.eup %1587 }
 0x3a7   : > { %v1010_v2 = vmul.f32 1.442695, %v906_v1  ;;  %v1012_v40 = vmul.f32 1.442695, %v907_v57  ;;  %1101 = vadd.xlane.f32.xlu0 %v1100_v22  ;;  %v908_v28 = vsub.f32 %v2628_v14, %v835_v37  ;;  %v909_v33 = vsub.f32 %v2629_v20, %v835_v37  ;;  %v2347_v7 = vpop.eup %1589  ;;  %v2633_v1 = vld [vmem:[#allocation9_spill] sm:$0xff]  ;;  %v2635_v20 = vld [vmem:[#allocation10_spill] sm:$0xff] }
 0x3a8   : > { %v1109_v22 = vadd.f32 %v2343_v50, %v2339_v32 }
 0x3a9   : > { %1599 = vpow2.f32 %v1010_v2  ;;  %v1014_v46 = vmul.f32 1.442695, %v908_v28  ;;  %v1016_v49 = vmul.f32 1.442695, %v909_v33  ;;  %v1106_v2 = vadd.f32 %v2347_v7, %v2337_v54 }
 0x3aa   : > { %1601 = vpow2.f32 %v1012_v40 }
 0x3ab   : > { %1603 = vpow2.f32 %v1014_v46  ;;  %1104 = vadd.xlane.f32.xlu0 %v1103_v45  ;;  %v2349_v16 = vpop.eup %1591  ;;  %v2636_v46 = vld [vmem:[#allocation11_spill] sm:$0xff] }
 0x3ac   : > { %2630 = vst [vmem:[#allocation20_spill] sm:$0xff] %v2349_v16  ;;  %1605 = vpow2.f32 %v1016_v49  ;;  %861 = vmax.xlane.f32.xlu1 %v860_v11  ;;  %v838_v47 = vpop.xlane.xlu1 %837 }
 0x3ad   : > { %v2351_v53 = vpop.eup %1593  ;;  %v910_v19 = vsub.f32 %v2632_v21, %v838_v47  ;;  %v911_v57 = vsub.f32 %v2633_v1, %v838_v47 }
 0x3ae   : > { %2631 = vst [vmem:[#allocation6_spill] sm:$0xff] %v2351_v53  ;;  %v2357_v30 = vpop.eup %1595  ;;  %v841_v37 = vpop.xlane.xlu0 %840 }
 0x3af   : > { %v2361_v40 = vpop.eup %1597  ;;  %v1018_v14 = vmul.f32 1.442695, %v910_v19  ;;  %v1020_v28 = vmul.f32 1.442695, %v911_v57  ;;  %1110 = vadd.xlane.f32.xlu0 %v1109_v22  ;;  %v912_v33 = vsub.f32 %v2635_v20, %v841_v37  ;;  %v913_v49 = vsub.f32 %v2636_v46, %v841_v37  ;;  %v2640_v37 = vld [vmem:[#allocation12_spill] sm:$0xff] }
 0x3b0   : > { %2634 = vst [vmem:[#allocation7_spill] sm:$0xff] %v2361_v40  ;;  %1107 = vadd.xlane.f32.xlu1 %v1106_v2  ;;  %v1115_v47 = vadd.f32 %v2357_v30, %v2351_v53  ;;  %v1112_v21 = vadd.f32 %v2361_v40, %v2349_v16  ;;  %v2644_v16 = vld [vmem:[#allocation15_spill] sm:$0xff] }
 0x3b1   : > { %1607 = vpow2.f32 %v1018_v14  ;;  %v1022_v45 = vmul.f32 1.442695, %v912_v33  ;;  %v1024_v11 = vmul.f32 1.442695, %v913_v49  ;;  %v2641_v14 = vld [vmem:[#allocation13_spill] sm:$0xff] }
 0x3b2   : > { %1609 = vpow2.f32 %v1020_v28 }
 0x3b3   : > { %v2369_v1 = vpop.eup %1599  ;;  %1611 = vpow2.f32 %v1022_v45  ;;  %1116 = vadd.xlane.f32.xlu0 %v1115_v47  ;;  %v2643_v47 = vld [vmem:[#allocation14_spill] sm:$0xff] }
 0x3b4   : > { %2637 = vst [vmem:[#allocation8_spill] sm:$0xff] %v2369_v1  ;;  %v2371_v19 = vpop.eup %1601  ;;  %1613 = vpow2.f32 %v1024_v11  ;;  %1113 = vadd.xlane.f32.xlu1 %v1112_v21  ;;  %v844_v57 = vpop.xlane.xlu1 %843 }
 0x3b5   : > { %2638 = vst [vmem:[#allocation9_spill] sm:$0xff] %v2371_v19  ;;  %v2373_v22 = vpop.eup %1603  ;;  %v914_v2 = vsub.f32 %v2640_v37, %v844_v57  ;;  %v915_v20 = vsub.f32 %v2641_v14, %v844_v57  ;;  %v1118_v28 = vadd.f32 %v2371_v19, %v2369_v1  ;;  %v2649_v1 = vld [vmem:[#allocation19_spill] sm:$0xff] }
 0x3b6   : > { %2639 = vst [vmem:[#allocation10_spill] sm:$0xff] %v2373_v22  ;;  %v2379_v33 = vpop.eup %1605  ;;  %v847_v46 = vpop.xlane.xlu0 %846 }
 0x3b7   : > { %2642 = vst [vmem:[#allocation11_spill] sm:$0xff] %v2379_v33  ;;  %v1026_v49 = vmul.f32 1.442695, %v914_v2  ;;  %v1028_v45 = vmul.f32 1.442695, %v915_v20  ;;  %v916_v53 = vsub.f32 %v2643_v47, %v847_v46  ;;  %v917_v11 = vsub.f32 %v2644_v16, %v847_v46  ;;  %v2646_v47 = vld [vmem:[#allocation16_spill] sm:$0xff] }
 0x3b8   : > { %1119 = vadd.xlane.f32.xlu1 %v1118_v28  ;;  %v1121_v21 = vadd.f32 %v2379_v33, %v2373_v22  ;;  %v2647_v28 = vld [vmem:[#allocation17_spill] sm:$0xff] }
 0x3b9   : > { %1615 = vpow2.f32 %v1026_v49  ;;  %v1030_v37 = vmul.f32 1.442695, %v916_v53  ;;  %v1032_v40 = vmul.f32 1.442695, %v917_v11 }
 0x3ba   : > { %1617 = vpow2.f32 %v1028_v45  ;;  %1122 = vadd.xlane.f32.xlu0 %v1121_v21 }
 0x3bb   : > { %v2385_v57 = vpop.eup %1607  ;;  %1619 = vpow2.f32 %v1030_v37  ;;  %v2648_v37 = vld [vmem:[#allocation18_spill] sm:$0xff] }
 0x3bc   : > { %2645 = vst [vmem:[#allocation12_spill] sm:$0xff] %v2385_v57  ;;  %v2387_v14 = vpop.eup %1609  ;;  %1621 = vpow2.f32 %v1032_v40  ;;  %v850_v2 = vpop.xlane.xlu1 %849 }
 0x3bd   : > { %v2389_v20 = vpop.eup %1611  ;;  %v918_v16 = vsub.f32 %v2646_v47, %v850_v2  ;;  %v919_v46 = vsub.f32 %v2647_v28, %v850_v2  ;;  %v1124_v49 = vadd.f32 %v2387_v14, %v2385_v57  ;;  %v2658_v57 = vld [vmem:[#allocation3_spill] sm:$0xff] }
 0x3be   : > { %v2395_v53 = vpop.eup %1613  ;;  %v853_v45 = vpop.xlane.xlu0 %852 }
 0x3bf   : > { %v1034_v11 = vmul.f32 1.442695, %v918_v16  ;;  %v1036_v21 = vmul.f32 1.442695, %v919_v46  ;;  %1125 = vadd.xlane.f32.xlu1 %v1124_v49  ;;  %v920_v22 = vsub.f32 %v2648_v37, %v853_v45  ;;  %v921_v40 = vsub.f32 %v2649_v1, %v853_v45 }
 0x3c0   : > { %v1127_v33 = vadd.f32 %v2395_v53, %v2389_v20 }
 0x3c1   : > { %1623 = vpow2.f32 %v1034_v11  ;;  %v1038_v47 = vmul.f32 1.442695, %v920_v22  ;;  %v1040_v19 = vmul.f32 1.442695, %v921_v40 }
 0x3c2   : > { %1625 = vpow2.f32 %v1036_v21  ;;  %1128 = vadd.xlane.f32.xlu0 %v1127_v33 }
 0x3c3   : > { %v2401_v2 = vpop.eup %1615  ;;  %1627 = vpow2.f32 %v1038_v47 }
 0x3c4   : > { %2650 = vst [vmem:[#allocation13_spill] sm:$0xff] %v2401_v2  ;;  %v2403_v28 = vpop.eup %1617  ;;  %1629 = vpow2.f32 %v1040_v19 }
 0x3c5   : > { %2651 = vst [vmem:[#allocation14_spill] sm:$0xff] %v2403_v28  ;;  %v2405_v16 = vpop.eup %1619  ;;  %v1130_v46 = vadd.f32 %v2403_v28, %v2401_v2 }
 0x3c6   : > { %2652 = vst [vmem:[#allocation15_spill] sm:$0xff] %v2405_v16  ;;  %v2409_v1 = vpop.eup %1621 }
 0x3c7   : > { %2653 = vst [vmem:[#allocation16_spill] sm:$0xff] %v2409_v1  ;;  %1131 = vadd.xlane.f32.xlu0 %v1130_v46  ;;  %v1133_v22 = vadd.f32 %v2409_v1, %v2405_v16  ;;  %v2659_v1 = vld [vmem:[#allocation4_spill] sm:$0xff] }
 0x3cb   : > { %v2413_v49 = vpop.eup %1623  ;;  %1134 = vadd.xlane.f32.xlu0 %v1133_v22 }
 0x3cc   : > { %2654 = vst [vmem:[#allocation17_spill] sm:$0xff] %v2413_v49  ;;  %v2415_v33 = vpop.eup %1625 }
 0x3cd   : > { %2655 = vst [vmem:[#allocation18_spill] sm:$0xff] %v2415_v33  ;;  %v2417_v45 = vpop.eup %1627  ;;  %v1136_v19 = vadd.f32 %v2415_v33, %v2413_v49 }
 0x3ce   : > { %2656 = vst [vmem:[#allocation19_spill] sm:$0xff] %v2417_v45  ;;  %v2421_v11 = vpop.eup %1629 }
 0x3cf   : > { %2657 = vst [vmem:[#allocation21_spill] sm:$0xff] %v2421_v11  ;;  %1137 = vadd.xlane.f32.xlu0 %v1136_v19  ;;  %v1139_v21 = vadd.f32 %v2421_v11, %v2417_v45 }
 0x3d3   : > { %1140 = vadd.xlane.f32.xlu0 %v1139_v21 }
 0x3f4   : > { %v1060_v37 = vpop.xlane.xlu1 %1059 }
 0x3f5   : > { %1631 = vrcp.f32 %v1060_v37 }
 0x3f6   : > { %v1063_v40 = vpop.xlane.xlu0 %1062 }
 0x3f7   : > { %1633 = vrcp.f32 %v1063_v40 }
 0x3fc   : > { %v1066_v47 = vpop.xlane.xlu1 %1065 }
 0x3fd   : > { %1635 = vrcp.f32 %v1066_v47 }
 0x3ff   : > { %v1632_v46 = vpop.eup %1631 }
 0x400   : > { %v1069_v22 = vpop.xlane.xlu0 %1068  ;;  %v1156_v16 = vmul.f32 %v1632_v46, %v2168_v51  ;;  %v1155_v21 = vmul.f32 %v1632_v46, %v2166_v58 }
 0x401   : > { %1637 = vrcp.f32 %v1069_v22  ;;  %v1634_v2 = vpop.eup %1633 }
 0x402   : > { %v1159_v49 = vmul.f32 %v1634_v2, %v2176_v27  ;;  %v1158_v19 = vmul.f32 %v1634_v2, %v2170_v29 }
 0x404   : > { %v1072_v33 = vpop.xlane.xlu1 %1071  ;;  %v856_v28 = vpop.xlane.xlu0 %855  ;;  %v1251_v45 = vpack.c.bf16 %v1159_v49, %v1156_v16  ;;  %v1250_v37 = vpack.c.bf16 %v1158_v19, %v1155_v21 }
 0x406   : > { %1282 = vmatprep.subr.bf16.mxu0 %v1251_v45 }
 0x407   : > { %v1636_v40 = vpop.eup %1635  ;;  %1283 = vmatpush1.bf16.xpose.msra.mxu0 %v1250_v37  ;;  %v923_v37 = vsub.f32 %v2200_v17, %v856_v28 }
 0x408   : > { %v268_v47 = vpop.permute.xlu1 %267  ;;  %v859_v11 = vpop.xlane.xlu0 %858  ;;  %v1162_v49 = vmul.f32 %v1636_v40, %v2183_v13  ;;  %v1161_v19 = vmul.f32 %v1636_v40, %v2180_v12  ;;  %v922_v12 = vsub.f32 %v2196_v61, %v856_v28 }
 0x409   : > { %v2430_v22 = vadd.f32 %v2658_v57, %v268_v47  ;;  %v2433_v51 = vadd.f32 %v2659_v1, %v268_v47  ;;  %v924_v27 = vsub.f32 %v2212_v3, %v859_v11  ;;  %v925_v29 = vsub.f32 %v2216_v55, %v859_v11 }
 0x40b   : > { %v1638_v2 = vpop.eup %1637  ;;  %v1506_v58 = vpack.i.bf16 %v2433_v51, %v2430_v22  ;;  %v1046_v16 = vmul.f32 1.442695, %v924_v27  ;;  %v1048_v45 = vmul.f32 1.442695, %v925_v29 }
 0x40c   : > { %v2440_v46 = vpop.xlane.xlu0 %864  ;;  %v1165_v57 = vmul.f32 %v1638_v2, %v2191_v60  ;;  %v1164_v1 = vmul.f32 %v1638_v2, %v2188_v8  ;;  %v1044_v2 = vmul.f32 1.442695, %v923_v37 }
 0x40d   : > { %1639 = vpow2.f32 %v1046_v16  ;;  %1507 = vrot.lane.b32.xlu1 %v1506_v58, %s1721_s11 }
 0x40e   : > { %1641 = vpow2.f32 %v1048_v45  ;;  %v1253_v3 = vpack.c.bf16 %v1165_v57, %v1162_v49  ;;  %v1252_v55 = vpack.c.bf16 %v1164_v1, %v1161_v19 }
 0x40f   : > { %1643 = vrcp.f32 %v1072_v33  ;;  %v1042_v33 = vmul.f32 1.442695, %v922_v12 }
 0x410   : > { %1284 = vmatprep.subr.bf16.mxu0 %v1253_v3  ;;  %v1075_v11 = vpop.xlane.xlu0 %1074 }
 0x411   : > { %1285 = vmatpush1.bf16.xpose.msra.mxu0 %v1252_v55  ;;  %1645 = vrcp.f32 %v1075_v11 }
 0x414   : > { %v1078_v13 = vpop.xlane.xlu0 %1077 }
 0x415   : > { %1647 = vrcp.f32 %v1078_v13 }
 0x417   : > { %v2446_v21 = vpop.eup %1639 }
 0x418   : > { %v2448_v60 = vpop.eup %1641  ;;  %v1081_v8 = vpop.xlane.xlu0 %1080 }
 0x419   : > { %1649 = vrcp.f32 %v1081_v8  ;;  %v1145_v40 = vadd.f32 %v2448_v60, %v2446_v21  ;;  %v1644_v47 = vpop.eup %1643 }
 0x41a   : > { %v1168_v58 = vmul.f32 %v1644_v47, %v2207_v23  ;;  %v1167_v49 = vmul.f32 %v1644_v47, %v2204_v4 }
 0x41b   : > { %1146 = vadd.xlane.f32.xlu0 %v1145_v40  ;;  %v1646_v29 = vpop.eup %1645 }
 0x41c   : > { %v1084_v27 = vpop.xlane.xlu0 %1083  ;;  %v1171_v16 = vmul.f32 %v1646_v29, %v2240_v41  ;;  %v1170_v61 = vmul.f32 %v1646_v29, %v2236_v63 }
 0x41d   : > { %1651 = vrcp.f32 %v1084_v27 }
 0x41e   : > { %1653 = vpow2.f32 %v1042_v33  ;;  %v1255_v17 = vpack.c.bf16 %v1171_v16, %v1168_v58  ;;  %v1254_v45 = vpack.c.bf16 %v1170_v61, %v1167_v49 }
 0x41f   : > { %v1648_v57 = vpop.eup %1647 }
 0x420   : > { %v1087_v28 = vpop.xlane.xlu0 %1086  ;;  %1286 = vmatprep.subr.bf16.mxu0 %v1255_v17  ;;  %v1174_v23 = vmul.f32 %v1648_v57, %v2248_v9  ;;  %v1173_v63 = vmul.f32 %v1648_v57, %v2244_v35 }
 0x421   : > { %1655 = vrcp.f32 %v1087_v28  ;;  %1287 = vmatpush1.bf16.xpose.msra.mxu0 %v1254_v45 }
 0x422   : > { %1657 = vpow2.f32 %v1044_v2 }
 0x423   : > { %v1650_v19 = vpop.eup %1649 }
 0x424   : > { %v1090_v1 = vpop.xlane.xlu0 %1089  ;;  %v1177_v41 = vmul.f32 %v1650_v19, %v2259_v56  ;;  %v1176_v4 = vmul.f32 %v1650_v19, %v2252_v6 }
 0x425   : > { %1659 = vrcp.f32 %v1090_v1 }
 0x426   : > { %v1257_v3 = vpack.c.bf16 %v1177_v41, %v1174_v23  ;;  %v1256_v55 = vpack.c.bf16 %v1176_v4, %v1173_v63 }
 0x427   : > { %v1652_v13 = vpop.eup %1651 }
 0x428   : > { %1288 = vmatprep.subr.bf16.mxu0 %v1257_v3  ;;  %v1093_v11 = vpop.xlane.xlu0 %1092  ;;  %v2462_v12 = vpop.eup %1653  ;;  %v1180_v56 = vmul.f32 %v1652_v13, %v2267_v39  ;;  %v1179_v40 = vmul.f32 %v1652_v13, %v2263_v34  ;;  %v928_v39 = vsub.f32 %v2226_v26, %v2440_v46 }
 0x429   : > { %1661 = vrcp.f32 %v1093_v11  ;;  %1289 = vmatpush1.bf16.xpose.msra.mxu0 %v1256_v55 }
 0x42a   : > { %v1054_v17 = vmul.f32 1.442695, %v928_v39 }
 0x42b   : > { %v1656_v8 = vpop.eup %1655 }
 0x42c   : > { %v2464_v37 = vpop.eup %1657  ;;  %v1096_v9 = vpop.xlane.xlu0 %1095  ;;  %v1183_v6 = vmul.f32 %v1656_v8, %v2275_v38  ;;  %v1182_v35 = vmul.f32 %v1656_v8, %v2271_v24  ;;  %v929_v24 = vsub.f32 %v2230_v10, %v2440_v46 }
 0x42d   : > { %1663 = vrcp.f32 %v1096_v9  ;;  %v1142_v33 = vadd.f32 %v2464_v37, %v2462_v12 }
 0x42e   : > { %v1259_v47 = vpack.c.bf16 %v1183_v6, %v1180_v56  ;;  %v1258_v27 = vpack.c.bf16 %v1182_v35, %v1179_v40  ;;  %v1056_v45 = vmul.f32 1.442695, %v929_v24 }
 0x42f   : > { %v1660_v2 = vpop.eup %1659 }
 0x430   : > { %1290 = vmatprep.subr.bf16.mxu0 %v1259_v47  ;;  %v1099_v29 = vpop.xlane.xlu0 %1098  ;;  %v1186_v38 = vmul.f32 %v1660_v2, %v2283_v44  ;;  %v1185_v61 = vmul.f32 %v1660_v2, %v2279_v52 }
 0x431   : > { %1665 = vrcp.f32 %v1099_v29  ;;  %1143 = vadd.xlane.f32.xlu1 %v1142_v33  ;;  %1291 = vmatpush1.bf16.xpose.msra.mxu0 %v1258_v27 }
 0x433   : > { %v1662_v58 = vpop.eup %1661 }
 0x434   : > { %v1102_v34 = vpop.xlane.xlu0 %1101  ;;  %v1189_v16 = vmul.f32 %v1662_v58, %v2291_v43  ;;  %v1188_v49 = vmul.f32 %v1662_v58, %v2287_v48 }
 0x435   : > { %1667 = vrcp.f32 %v1102_v34 }
 0x436   : > { %v1261_v28 = vpack.c.bf16 %v1189_v16, %v1186_v38  ;;  %v1260_v57 = vpack.c.bf16 %v1188_v49, %v1185_v61  ;;  %v2660_v16 = vld [vmem:[#allocation7_spill] sm:$0xff] }
 0x437   : > { %v1664_v26 = vpop.eup %1663 }
 0x438   : > { %1292 = vmatprep.subr.bf16.mxu0 %v1261_v28  ;;  %v1105_v19 = vpop.xlane.xlu0 %1104  ;;  %v1192_v52 = vmul.f32 %v1664_v26, %v2301_v25  ;;  %v1191_v3 = vmul.f32 %v1664_v26, %v2296_v36  ;;  %v2662_v26 = vld [vmem:[#allocation6_spill] sm:$0xff] }
 0x439   : > { %1669 = vrcp.f32 %v1105_v19  ;;  %v862_v10 = vpop.xlane.xlu1 %861  ;;  %1293 = vmatpush1.bf16.xpose.msra.mxu0 %v1260_v57 }
 0x43a   : > { %1671 = vpow2.f32 %v1054_v17  ;;  %v926_v46 = vsub.f32 %v2329_v0, %v862_v10  ;;  %v927_v44 = vsub.f32 %v2333_v18, %v862_v10  ;;  %v2663_v10 = vld [vmem:[#allocation9_spill] sm:$0xff] }
 0x43b   : > { %v1666_v43 = vpop.eup %1665  ;;  %1673 = vpow2.f32 %v1056_v45 }
 0x43c   : > { %v1050_v48 = vmul.f32 1.442695, %v926_v46  ;;  %v1052_v1 = vmul.f32 1.442695, %v927_v44  ;;  %v1111_v23 = vpop.xlane.xlu0 %1110  ;;  %v1195_v41 = vmul.f32 %v1666_v43, %v2305_v42  ;;  %v1194_v4 = vmul.f32 %v1666_v43, %v2303_v62  ;;  %v2664_v44 = vld [vmem:[#allocation11_spill] sm:$0xff] }
 0x43d   : > { %1675 = vrcp.f32 %v1111_v23  ;;  %v1108_v63 = vpop.xlane.xlu1 %1107 }
 0x43e   : > { %1677 = vpow2.f32 %v1050_v48  ;;  %v1263_v0 = vpack.c.bf16 %v1195_v41, %v1192_v52  ;;  %v1262_v18 = vpack.c.bf16 %v1194_v4, %v1191_v3 }
 0x43f   : > { %1679 = vpow2.f32 %v1052_v1  ;;  %v1668_v11 = vpop.eup %1667 }
 0x440   : > { %1681 = vrcp.f32 %v1108_v63  ;;  %1294 = vmatprep.subr.bf16.mxu0 %v1263_v0  ;;  %v1117_v55 = vpop.xlane.xlu0 %1116  ;;  %v1198_v62 = vmul.f32 %v1668_v11, %v2317_v5  ;;  %v1197_v6 = vmul.f32 %v1668_v11, %v2315_v15  ;;  %v2665_v63 = vld [vmem:[#allocation8_spill] sm:$0xff]  ;;  %v2666_v0 = vld [vmem:[#allocation10_spill] sm:$0xff] }
 0x441   : > { %1683 = vrcp.f32 %v1117_v55  ;;  %v1114_v25 = vpop.xlane.xlu1 %1113  ;;  %1295 = vmatpush1.bf16.xpose.msra.mxu0 %v1262_v18 }
 0x442   : > { %1685 = vrcp.f32 %v1114_v25 }
 0x443   : > { %v1670_v13 = vpop.eup %1669 }
 0x444   : > { %v2486_v42 = vpop.eup %1671  ;;  %v1201_v8 = vmul.f32 %v1670_v13, %v2325_v31  ;;  %v1200_v36 = vmul.f32 %v1670_v13, %v2319_v59 }
 0x445   : > { %v2491_v9 = vpop.eup %1673  ;;  %v1120_v56 = vpop.xlane.xlu1 %1119 }
 0x446   : > { %v1265_v35 = vpack.c.bf16 %v1201_v8, %v1198_v62  ;;  %v1264_v33 = vpack.c.bf16 %v1200_v36, %v1197_v6  ;;  %1687 = vrcp.f32 %v1120_v56  ;;  %v2667_v6 = vld [vmem:[#allocation16_spill] sm:$0xff] }
 0x447   : > { %v1676_v40 = vpop.eup %1675  ;;  %v1123_v47 = vpop.xlane.xlu0 %1122 }
 0x448   : > { %v2494_v27 = vpop.eup %1677  ;;  %1296 = vmatprep.subr.bf16.mxu0 %v1265_v35  ;;  %1689 = vrcp.f32 %v1123_v47  ;;  %v1207_v5 = vmul.f32 %v1676_v40, %v2343_v50  ;;  %v1206_v38 = vmul.f32 %v1676_v40, %v2339_v32  ;;  %v1151_v50 = vadd.f32 %v2491_v9, %v2486_v42  ;;  %v2668_v40 = vld [vmem:[#allocation12_spill] sm:$0xff] }
 0x449   : > { %v2496_v29 = vpop.eup %1679  ;;  %1297 = vmatpush1.bf16.xpose.msra.mxu0 %v1264_v33  ;;  %v2669_v33 = vld [vmem:[#allocation14_spill] sm:$0xff] }
 0x44a   : > { %v1682_v31 = vpop.eup %1681  ;;  %v1148_v59 = vadd.f32 %v2496_v29, %v2494_v27 }
 0x44b   : > { %v1684_v2 = vpop.eup %1683  ;;  %v1204_v15 = vmul.f32 %v1682_v31, %v2347_v7  ;;  %v1203_v34 = vmul.f32 %v1682_v31, %v2337_v54 }
 0x44c   : > { %v1686_v39 = vpop.eup %1685  ;;  %1149 = vadd.xlane.f32.xlu0 %v1148_v59  ;;  %v1213_v58 = vmul.f32 %v1684_v2, %v2357_v30  ;;  %v1126_v17 = vpop.xlane.xlu1 %1125  ;;  %v2661_v30 = vld [vmem:[#allocation20_spill] sm:$0xff]  ;;  %v1212_v19 = vmul.f32 %v1684_v2, %v2662_v26  ;;  %v2670_v2 = vld [vmem:[#allocation15_spill] sm:$0xff] }
 0x44d   : > { %v1267_v24 = vpack.c.bf16 %v1207_v5, %v1204_v15  ;;  %v1210_v49 = vmul.f32 %v1686_v39, %v2660_v16  ;;  %v1266_v7 = vpack.c.bf16 %v1206_v38, %v1203_v34  ;;  %v1209_v32 = vmul.f32 %v1686_v39, %v2661_v30  ;;  %v2671_v39 = vld [vmem:[#allocation21_spill] sm:$0xff]  ;;  %v2673_v38 = vld [vmem:[#allocation18_spill] sm:$0xff] }
 0x44e   : > { %v2676_v30 = vld [vmem:[#allocation5_spill] sm:$0xff] }
 0x44f   : > { %1298 = vmatprep.subr.bf16.mxu0 %v1267_v24  ;;  %v1129_v61 = vpop.xlane.xlu0 %1128  ;;  %v1269_v28 = vpack.c.bf16 %v1213_v58, %v1210_v49  ;;  %v1268_v48 = vpack.c.bf16 %v1212_v19, %v1209_v32  ;;  %v2672_v24 = vld [vmem:[#allocation13_spill] sm:$0xff] }
 0x450   : > { %1152 = vadd.xlane.f32.xlu0 %v1151_v50  ;;  %1691 = vrcp.f32 %v1129_v61  ;;  %v1688_v45 = vpop.eup %1687  ;;  %v2674_v50 = vld [vmem:[#allocation19_spill] sm:$0xff] }
 0x451   : > { %1693 = vrcp.f32 %v1126_v17  ;;  %1299 = vmatpush1.bf16.xpose.msra.mxu0 %v1266_v7  ;;  %v1216_v46 = vmul.f32 %v1688_v45, %v2663_v10  ;;  %v1215_v3 = vmul.f32 %v1688_v45, %v2665_v63  ;;  %v2675_v17 = vld [vmem:[#allocation17_spill] sm:$0xff] }
 0x452   : > { %v1690_v57 = vpop.eup %1689  ;;  %1300 = vmatprep.subr.bf16.mxu0 %v1269_v28 }
 0x453   : > { %v1219_v43 = vmul.f32 %v1690_v57, %v2664_v44  ;;  %v1218_v18 = vmul.f32 %v1690_v57, %v2666_v0  ;;  %v1326_v44 = vld [vmem:[%s2568_s4] sm:$0xf] }
 0x454   : > { %v1132_v54 = vpop.xlane.xlu0 %1131 }
 0x455   : > { %v1271_v1 = vpack.c.bf16 %v1219_v43, %v1216_v46  ;;  %v1270_v13 = vpack.c.bf16 %v1218_v18, %v1215_v3 }
 0x458   : > { %v1135_v52 = vpop.xlane.xlu0 %1134 }
 0x459   : > { %1695 = vrcp.f32 %v1135_v52  ;;  %1301 = vmatpush1.bf16.xpose.msra.mxu0 %v1268_v48 }
 0x45a   : > { %v1692_v23 = vpop.eup %1691  ;;  %1697 = vrcp.f32 %v1132_v54  ;;  %1302 = vmatprep.subr.bf16.mxu0 %v1271_v1 }
 0x45b   : > { %v1694_v4 = vpop.eup %1693  ;;  %v1225_v55 = vmul.f32 %v1692_v23, %v2395_v53  ;;  %v1224_v56 = vmul.f32 %v1692_v23, %v2389_v20 }
 0x45c   : > { %v1138_v41 = vpop.xlane.xlu0 %1137  ;;  %v1222_v25 = vmul.f32 %v1694_v4, %v2387_v14  ;;  %v1221_v47 = vmul.f32 %v1694_v4, %v2668_v40 }
 0x45e   : > { %v1273_v62 = vpack.c.bf16 %v1225_v55, %v1222_v25  ;;  %v1272_v53 = vpack.c.bf16 %v1224_v56, %v1221_v47 }
 0x460   : > { %v1141_v11 = vpop.xlane.xlu0 %1140 }
 0x461   : > { %1699 = vrcp.f32 %v1141_v11  ;;  %1303 = vmatpush1.bf16.xpose.msra.mxu0 %v1270_v13 }
 0x462   : > { %1701 = vrcp.f32 %v1138_v41  ;;  %1304 = vmatprep.subr.bf16.mxu0 %v1273_v62 }
 0x463   : > { %v1696_v8 = vpop.eup %1695 }
 0x464   : > { %v1698_v36 = vpop.eup %1697  ;;  %v1231_v35 = vmul.f32 %v1696_v8, %v2667_v6  ;;  %v1230_v15 = vmul.f32 %v1696_v8, %v2670_v2 }
 0x465   : > { %v1228_v5 = vmul.f32 %v1698_v36, %v2669_v33  ;;  %v1227_v34 = vmul.f32 %v1698_v36, %v2672_v24  ;;  %v1711_v24 = vld [vmem:[%s1783_s28] sm:$0xff] }
 0x467   : > { %v1275_v31 = vpack.c.bf16 %v1231_v35, %v1228_v5  ;;  %v1274_v16 = vpack.c.bf16 %v1230_v15, %v1227_v34 }
 0x469   : > { %1305 = vmatpush1.bf16.xpose.msra.mxu0 %v1272_v53 }
 0x46a   : > { %1306 = vmatprep.subr.bf16.mxu0 %v1275_v31  ;;  %v1323_v31 = vld [vmem:[%s2567_s3] sm:$0x3] }
 0x46b   : > { %v1700_v59 = vpop.eup %1699 }
 0x46c   : > { %v1702_v14 = vpop.eup %1701  ;;  %v1237_v58 = vmul.f32 %v1700_v59, %v2671_v39  ;;  %v1236_v61 = vmul.f32 %v1700_v59, %v2674_v50 }
 0x46d   : > { %v1234_v20 = vmul.f32 %v1702_v14, %v2673_v38  ;;  %v1233_v28 = vmul.f32 %v1702_v14, %v2675_v17 }
 0x46f   : > { %v1277_v49 = vpack.c.bf16 %v1237_v58, %v1234_v20  ;;  %v1276_v7 = vpack.c.bf16 %v1236_v61, %v1233_v28  ;;  %v2681_v20 = vld [vmem:[#allocation2_spill] sm:$0xff] }
 0x471   : > { %1307 = vmatpush1.bf16.xpose.msra.mxu0 %v1274_v16 }
 0x472   : > { %1308 = vmatprep.subr.bf16.mxu0 %v1277_v49 }
 0x479   : > { %1309 = vmatpush1.bf16.xpose.msra.mxu0 %v1276_v7 }
 0x47f   : > { %v1508_v45 = vpop.permute.xlu1 %1507 }
 0x480   : > { %v1510_v57 = vunpack.i.h.bf16 %v1508_v45  ;;  %v1509_v54 = vunpack.i.l.bf16 %v1508_v45 }
 0x482   : > { %v364_v32 = vsel %vm363_vm2, %v1509_v54, %v1510_v57  ;;  %v366_v26 = vsel %vm363_vm2, %v1510_v57, %v1509_v54  ;;  %vm2677_vm2 = vcmp.lt.s32.totalorder %v2676_v30, 16 }
 0x483   : > { %v368_v19 = vmax.f32 %v2430_v22, %v366_v26  ;;  %v369_v10 = vmax.f32 %v2433_v51, %v364_v32  ;;  %vm2678_vm3 = vmmov %vm2677_vm2 }
 0x485   : > { %v1511_v46 = vpack.i.bf16 %v369_v10, %v368_v19 }
 0x487   : > { %1512 = vrot.lane.b32.xlu0 %v1511_v46, %s1722_s12 }
 0x48b   : > { %1329 = vperm.xlu0 %1494, %v1326_v44  }
 0x4a8   : > { %v1147_v43 = vpop.xlane.xlu0 %1146 }
 0x4a9   : > { %1703 = vrcp.f32 %v1147_v43 }
 0x4b3   : > { %v1704_v48 = vpop.eup %1703 }
 0x4b4   : > { %v1243_v22 = vmul.f32 %v1704_v48, %v2448_v60  ;;  %v1242_v41 = vmul.f32 %v1704_v48, %v2446_v21 }
 0x4be   : > { %v1144_v52 = vpop.xlane.xlu1 %1143 }
 0x4bf   : > { %1705 = vrcp.f32 %v1144_v52 }
 0x4c9   : > { %v1706_v1 = vpop.eup %1705 }
 0x4ca   : > { %v1240_v23 = vmul.f32 %v1706_v1, %v2464_v37  ;;  %v1239_v51 = vmul.f32 %v1706_v1, %v2462_v12 }
 0x4cc   : > { %v1279_v4 = vpack.c.bf16 %v1243_v22, %v1240_v23  ;;  %v1278_v63 = vpack.c.bf16 %v1242_v41, %v1239_v51 }
 0x4ce   : > { %1310 = vmatprep.subr.bf16.mxu0 %v1279_v4 }
 0x4cf   : > { %1311 = vmatpush1.bf16.xpose.msra.mxu0 %v1278_v63 }
 0x4d9   : > { %v1150_v3 = vpop.xlane.xlu0 %1149 }
 0x4da   : > { %1707 = vrcp.f32 %v1150_v3 }
 0x4dd   : > { %v1153_v0 = vpop.xlane.xlu0 %1152 }
 0x4de   : > { %1709 = vrcp.f32 %v1153_v0 }
 0x4e4   : > { %v1708_v18 = vpop.eup %1707 }
 0x4e5   : > { %v1246_v11 = vmul.f32 %v1708_v18, %v2496_v29  ;;  %v1245_v60 = vmul.f32 %v1708_v18, %v2494_v27 }
 0x4e8   : > { %v1710_v55 = vpop.eup %1709 }
 0x4e9   : > { %v1249_v37 = vmul.f32 %v1710_v55, %v2491_v9  ;;  %v1248_v12 = vmul.f32 %v1710_v55, %v2486_v42 }
 0x4eb   : > { %v1281_v25 = vpack.c.bf16 %v1249_v37, %v1246_v11  ;;  %v1280_v21 = vpack.c.bf16 %v1248_v12, %v1245_v60 }
 0x4ed   : > { %1312 = vmatprep.subr.bf16.mxu0 %v1281_v25 }
 0x4ee   : > { %1313 = vmatpush1.bf16.xpose.msra.mxu0 %v1280_v21 }
 0x4f9   : > { %v1513_v13 = vpop.permute.xlu0 %1512 }
 0x4fa   : > { %v1515_v62 = vunpack.i.h.bf16 %v1513_v13  ;;  %v1514_v8 = vunpack.i.l.bf16 %v1513_v13 }
 0x4fc   : > { %v383_v36 = vsel %vm2677_vm2, %v1515_v62, %v1514_v8  ;;  %v381_v56 = vsel %vm2678_vm3, %v1514_v8, %v1515_v62 }
 0x4fd   : > { %v385_v29 = vmax.f32 %v368_v19, %v383_v36  ;;  %v386_v6 = vmax.f32 %v369_v10, %v381_v56 }
 0x4ff   : > { %v389_v9 = vpack.c.bf16 %v385_v29, %v385_v29  ;;  %v390_v35 = vpack.c.bf16 %v386_v6, %v386_v6 }
 0x501   : > { %1314 = vmatprep.mubr.bf16.mxu0 %v390_v35 }
 0x502   : > { %1315 = vmatmul.mubr.bf16.vlgmr.msra.gmra.mrb[8].mxu0 %v389_v9 }
 0x50a   : > { %v1330_v59 = vpop.permute.xlu0 %1329 }
 0x5d5   : > { %v1316_v42 = vpop.f32.mrb[8].mxu0 }
 0x5d6   : > { %v1324_v27 = vpack.c.bf16 %v1316_v42, %v1316_v42  ;;  %v1318_v40 = vpop.f32.mrb[9].mxu0 }
 0x5d7   : > { %v1325_v47 = vpack.c.bf16 %v1318_v40, %v1318_v40  ;;  %v1320_v33 = vpop.f32.mrb[10].mxu0 }
 0x5d8   : > { %v1336_v5 = vsel %vm2679_vm4, %v1324_v27, 0  ;;  %v1321_v53 = vpop.f32.mrb[11].mxu0 }
 0x5d9   : > { %1475 = vmatprep.subr.msk.bf16.mxu1 %vm2680_vm6, %v1325_v47 }
 0x5da   : > { %1342 = vmatpush1.bf16.msra.mxu1 %v1336_v5 }
 0x5dd   : > { %1476 = vmatmul.mubr.msk.bf16.vlgmr.msra.gmra.mrb[64].mxu1 %vm521_vm5, %v1323_v31 }
 0x6b0   : > { %v1375_v14 = vpop.f32.mrb[64].mxu1 }
 0x6b1   : > { %v1376_v2 = vadd.f32 %v1375_v14, %v1330_v59  ;;  %v1377_v15 = vpop.f32.mrb[65].mxu1 }
 0x6b2   : > { %v1378_v39 = vadd.f32 %v1377_v15, %v1330_v59  ;;  %v1379_v58 = vpop.f32.mrb[66].mxu1 }
 0x6b3   : > { %v1382_v34 = vadd.f32 %v1711_v24, %v1376_v2  ;;  %v1380_v38 = vpop.f32.mrb[67].mxu1 }
 0x6b4   : > { %v1383_v16 = vadd.f32 %v1378_v39, %v2681_v20 }
 0x6b6   : > { %v1386_v49 = vcombine.low %v1382_v34, %v1383_v16 }
 0x6b8   : > { %1388 = vst [vmem:[%s251_s26] sm:$0xff] %v1386_v49 }
 0x6b9 PF: > { %s16_s21 = sadd.s32 1, %s1718_s21  }
 0x6ba   : > { %p13_p4 = scmp.ge.s32.totalorder %s16_s21, 4  }
 0x6bc   :  { %15 = sbr.rel (!%p13_p4) target bundleno = 1 (0x1), region = 74 }

</bundles_post_ra>
